<compile_context>
chip_gen: v5e
topology: v5e:2x2
jax: 0.10.0
libtpu: 0.0.40
codegen_flags: <defaults>
</compile_context>

<pallas_src>
import jax
import jax.numpy as jnp
from jax import lax
from jax.experimental import pallas as pl
from jax.experimental.pallas import tpu as pltpu


# ----------------------------------------------------------------------------
# In-kernel helpers / kernels
# ----------------------------------------------------------------------------

def _conv3x3_write(inner, w_ref, b_ref, o_ref):
    """Zero-pad(1) -> 9-tap im2col -> single bf16 matmul -> +bias -> store.

    inner: (H, W, C) f32 value already resident in VMEM/vregs.
    w_ref: (9*C, Cout) bf16, K ordered (dy, dx, c)  (BN folded in).
    b_ref: (1, Cout) f32 folded BN bias.
    o_ref: (1, H*W, Cout) f32 output block.
    """
    H, W, C = inner.shape
    HW = H * W
    zc = jnp.zeros((H, 1, C), inner.dtype)
    zr = jnp.zeros((1, W + 2, C), inner.dtype)
    xpad = jnp.concatenate(
        [zr, jnp.concatenate([zc, inner, zc], axis=1), zr], axis=0)   # (H+2, W+2, C)
    bands = []
    for dy in range(3):
        band = xpad[dy:dy + H]                                        # (H, W+2, C)
        bands.append(jnp.concatenate(
            [band[:, dx:dx + W, :] for dx in range(3)], axis=-1))     # (H, W, 3C)
    pat = jnp.concatenate(bands, axis=-1)                             # (H, W, 9C)
    pat = pat.reshape(HW, 9 * C).astype(jnp.bfloat16)                 # im2col slab
    acc = jnp.dot(pat, w_ref[...], preferred_element_type=jnp.float32)
    o_ref[0] = acc + b_ref[...]


def _level0_kernel(x_ref, w_ref, b_ref, o_ref):
    """First pyramid level: fused (cls+reg) 3x3 head only."""
    _conv3x3_write(x_ref[0], w_ref, b_ref, o_ref)


def _level_fused_kernel(xc_ref, xp_ref, wds_ref, dsb_ref, w_ref, b_ref, o_ref):
    """Levels >= 1: downsample(prev) -> concat with current -> fused 3x3 head.

    xc_ref:  (1, H, W, Cc) current level features (f32)
    xp_ref:  (1, H, W, Cp) previous level features, already ::2 sampled (f32)
    wds_ref: (Cp, Cd) f32 downsample 1x1 weight with BN scale folded in
    dsb_ref: (1, Cd) f32 downsample BN shift (bias)
    w_ref:   (9*(Cc+Cd), Cout) bf16 fused cls+reg weight (BN folded)
    b_ref:   (1, Cout) f32 fused bias
    o_ref:   (1, H*W, Cout) f32
    """
    _, H, W, _ = xc_ref.shape
    Cp = xp_ref.shape[-1]
    Cd = wds_ref.shape[-1]
    xp = xp_ref[0].reshape(H * W, Cp)
    # TODO(synk): SingleStepSpikingBlock source not provided; approximated as
    # Conv2d(1x1, stride=2, bias=False) + BatchNorm2d(eval) + single-step IF
    # neuron (Heaviside spike at v_threshold = 1.0 from zero initial potential).
    v = jnp.dot(xp, wds_ref[...], preferred_element_type=jnp.float32) + dsb_ref[...]
    down = (v >= 1.0).astype(jnp.float32).reshape(H, W, Cd)
    inner = jnp.concatenate([xc_ref[0], down], axis=-1)   # channel order [feat, down]
    _conv3x3_write(inner, w_ref, b_ref, o_ref)


# ----------------------------------------------------------------------------
# pallas_call wrappers
# ----------------------------------------------------------------------------

def _run_level(x_cur, w2, bias, x_prev_sub=None, wds=None, ds_bias=None):
    N, H, W, Cc = x_cur.shape
    Cout = w2.shape[-1]
    HW = H * W
    out_shape = jax.ShapeDtypeStruct((N, HW, Cout), jnp.float32)
    out_spec = pl.BlockSpec((1, HW, Cout), lambda n: (n, 0, 0))
    x_spec = pl.BlockSpec((1, H, W, Cc), lambda n: (n, 0, 0, 0))
    w_spec = pl.BlockSpec(w2.shape, lambda n: (0, 0))
    b_spec = pl.BlockSpec((1, Cout), lambda n: (0, 0))
    # NOTE: for real-model channel counts on v7x, add a spatial grid axis and
    # set pltpu.CompilerParams(vmem_limit_bytes=...) here.
    cparams = pltpu.CompilerParams(dimension_semantics=("parallel",))

    if x_prev_sub is None:
        return pl.pallas_call(
            _level0_kernel,
            out_shape=out_shape,
            grid=(N,),
            in_specs=[x_spec, w_spec, b_spec],
            out_specs=out_spec,
            compiler_params=cparams,
        )(x_cur, w2, bias)

    Cp = x_prev_sub.shape[-1]
    Cd = wds.shape[-1]
    return pl.pallas_call(
        _level_fused_kernel,
        out_shape=out_shape,
        grid=(N,),
        in_specs=[
            x_spec,
            pl.BlockSpec((1, H, W, Cp), lambda n: (n, 0, 0, 0)),
            pl.BlockSpec((Cp, Cd), lambda n: (0, 0)),
            pl.BlockSpec((1, Cd), lambda n: (0, 0)),
            w_spec,
            b_spec,
        ],
        out_specs=out_spec,
        compiler_params=cparams,
    )(x_cur, x_prev_sub, wds, ds_bias, w2, bias)


# ----------------------------------------------------------------------------
# BN folding / weight fusion (done once per call in XLA -- cheap)
# ----------------------------------------------------------------------------

def _fold_bn_into_conv(w, scale, shift):
    # Sequential(ConstantPad2d(1,0), BatchNorm2d(eval), Conv2d(3x3, bias=False)):
    #   conv(x*s + b) == conv_{w*s}(x_pad0) + sum_{kh,kw,cin} w*b
    # which is exact everywhere, including windows that overlap the padding.
    w_f = w * scale[0][None, None, :, None]                 # scale per input channel
    bias = jnp.einsum("ijco,c->o", w, shift[0])             # constant per out channel
    return w_f, bias


def _fused_head_weights(p_cls, p_reg):
    w_cls, b_cls = _fold_bn_into_conv(p_cls["w"], p_cls["scale"], p_cls["shift"])
    w_reg, b_reg = _fold_bn_into_conv(p_reg["w"], p_reg["scale"], p_reg["shift"])
    w = jnp.concatenate([w_cls, w_reg], axis=-1)            # (3,3,C, A*nc + A*4)
    kh, kw, C, Cout = w.shape
    w2 = w.reshape(kh * kw * C, Cout).astype(jnp.bfloat16)  # K ordered (dy, dx, c)
    bias = jnp.concatenate([b_cls, b_reg])[None, :].astype(jnp.float32)
    return w2, bias


# ----------------------------------------------------------------------------
# Deterministic parameter construction (mirrors __init__ + init_weights)
# ----------------------------------------------------------------------------

def _kaiming_conv(key, cout, cin, kh, kw):
    fan_in = cin * kh * kw
    std = (2.0 / fan_in) ** 0.5
    w = jax.random.normal(key, (cout, cin, kh, kw), jnp.float32) * std
    return jnp.transpose(w, (2, 3, 1, 0))                   # -> (kH, kW, Cin, Cout)


def init_dsod_head_params(key, in_channels, num_anchors, num_classes):
    keys = iter(jax.random.split(key, 4 * len(in_channels) + 4))
    params = {"downsample": [], "cls": [], "reg": []}
    # downsample blocks: Conv2d(in_c, next_c, k=1, stride=2) + BN (weight=1, bias=0)
    for in_c, next_c in zip(in_channels[:-1], in_channels[1:]):
        params["downsample"].append({
            "w": _kaiming_conv(next(keys), next_c, in_c, 1, 1)[0, 0],   # (Cin, Cout)
            "scale": jnp.ones((1, next_c), jnp.float32),
            "shift": jnp.zeros((1, next_c), jnp.float32),
        })
    head_channels = [in_channels[0]] + [2 * c for c in in_channels[1:]]
    for ch, a in zip(head_channels, num_anchors):
        params["cls"].append({
            "w": _kaiming_conv(next(keys), num_classes * a, ch, 3, 3),
            "scale": jnp.ones((1, ch), jnp.float32),
            "shift": jnp.zeros((1, ch), jnp.float32),
        })
        params["reg"].append({
            "w": _kaiming_conv(next(keys), 4 * a, ch, 3, 3),
            "scale": jnp.ones((1, ch), jnp.float32),
            "shift": jnp.zeros((1, ch), jnp.float32),
        })
    return params


# ----------------------------------------------------------------------------
# DSODHead forward
# ----------------------------------------------------------------------------

def dsod_head_forward(xs_nchw, params, num_anchors, num_classes):
    xs = [jnp.transpose(x, (0, 2, 3, 1)) for x in xs_nchw]   # NCHW -> NHWC
    cls_out, reg_out = [], []
    for i, (x, a) in enumerate(zip(xs, num_anchors)):
        w2, bias = _fused_head_weights(params["cls"][i], params["reg"][i])
        if i == 0:
            o = _run_level(x, w2, bias)
        else:
            pds = params["downsample"][i - 1]
            wds = (pds["w"] * pds["scale"]).astype(jnp.float32)   # fold BN scale
            # stride-2 sampling of the 1x1 conv input (quarter-size array);
            # everything else (conv, BN, spike, concat, pad, fused heads) runs
            # inside one Pallas kernel for this level.
            x_prev_sub = xs[i - 1][:, ::2, ::2, :]
            o = _run_level(x, w2, bias, x_prev_sub, wds, pds["shift"])
        N, HW, _ = o.shape
        ncls = a * num_classes
        # (N, HW, A*ncol) -> (N, HW*A, ncol): matches DSODScoringHead's
        # view/permute/reshape since Cout is ordered (anchor, column).
        cls_out.append(o[..., :ncls].reshape(N, HW * a, num_classes))
        reg_out.append(o[..., ncls:].reshape(N, HW * a, 4))
    return {
        "bbox_regression": jnp.concatenate(reg_out, axis=1),
        "cls_logits": jnp.concatenate(cls_out, axis=1),
    }


# ----------------------------------------------------------------------------
# Pure-JAX reference for validation
# ----------------------------------------------------------------------------

def _ref_forward(xs_nchw, params, num_anchors, num_classes):
    xs = [jnp.transpose(x, (0, 2, 3, 1)) for x in xs_nchw]
    last = xs[0]
    cat_features = [last]
    for i, feats in enumerate(xs[1:]):
        p = params["downsample"][i]
        w = p["w"].reshape(1, 1, *p["w"].shape)
        y = lax.conv_general_dilated(last, w, (2, 2), "VALID",
                                     dimension_numbers=("NHWC", "HWIO", "NHWC"))
        y = y * p["scale"][0] + p["shift"][0]
        down = (y >= 1.0).astype(jnp.float32)
        cat_features.append(jnp.concatenate([feats, down], axis=-1))
        last = feats

    def run(head_params, ncol):
        outs = []
        for f, p, a in zip(cat_features, head_params, num_anchors):
            fp = jnp.pad(f, ((0, 0), (1, 1), (1, 1), (0, 0)))
            fp = fp * p["scale"][0] + p["shift"][0]
            o = lax.conv_general_dilated(fp, p["w"], (1, 1), "VALID",
                                         dimension_numbers=("NHWC", "HWIO", "NHWC"))
            N, H, W, _ = o.shape
            outs.append(o.reshape(N, H * W * a, ncol))
        return jnp.concatenate(outs, axis=1)

    return {"bbox_regression": run(params["reg"], 4),
            "cls_logits": run(params["cls"], num_classes)}


# ----------------------------------------------------------------------------

if __name__ == "__main__":
    key = jax.random.PRNGKey(0)
    N = 2
    in_channels = [8, 16, 32]
    num_anchors = [2, 2, 2]
    num_classes = 3
    spatial = [16, 8, 4]

    kx, kp = jax.random.split(key)
    xkeys = jax.random.split(kx, len(in_channels))
    xs = [jax.random.normal(k, (N, c, s, s), jnp.float32)
          for k, c, s in zip(xkeys, in_channels, spatial)]

    params = init_dsod_head_params(kp, in_channels, num_anchors, num_classes)

    out = dsod_head_forward(xs, params, num_anchors, num_classes)
    out = jax.tree_util.tree_map(jax.block_until_ready, out)

    total_anchors = sum(s * s * a for s, a in zip(spatial, num_anchors))
    assert out["bbox_regression"].shape == (N, total_anchors, 4)
    assert out["cls_logits"].shape == (N, total_anchors, num_classes)

    ref = _ref_forward(xs, params, num_anchors, num_classes)
    # tolerance loosened vs v1 because the fused 3x3 head matmul now runs with
    # bf16 operands (f32 accumulation); the spike path stays f32.
    for name in ("bbox_regression", "cls_logits"):
        assert jnp.allclose(out[name], ref[name], atol=5e-2, rtol=5e-2), name

    print("KERNEL_OK")
</pallas_src>

<mosaic_0001>
module attributes {stable_mosaic.version = 11 : i64} {
  func.func @_level0_kernel(%arg0: i32, %arg1: memref<1x16x16x8xf32, #tpu.memory_space<vmem>>, %arg2: memref<72x14xbf16, #tpu.memory_space<vmem>>, %arg3: memref<1x14xf32, #tpu.memory_space<vmem>>, %arg4: memref<1x256x14xf32, #tpu.memory_space<vmem>>) attributes {dimension_semantics = [#tpu.dimension_semantics<parallel>], iteration_bounds = array<i64: 2>, scalar_prefetch = 0 : i64, scratch_operands = 0 : i64, tpu.core_type = #tpu.core_type<tc>, window_params = [{transform_indices = @transform_0, window_bounds = array<i64: 1, 16, 16, 8>}, {pipeline_mode = #tpu.pipeline_mode<synchronous>, transform_indices = @transform_1, window_bounds = array<i64: 72, 14>}, {pipeline_mode = #tpu.pipeline_mode<synchronous>, transform_indices = @transform_2, window_bounds = array<i64: 1, 14>}, {transform_indices = @transform_3, window_bounds = array<i64: 1, 256, 14>}]} {
    %c0 = arith.constant 0 : index
    %c0_0 = arith.constant 0 : index
    %c0_1 = arith.constant 0 : index
    %c0_2 = arith.constant 0 : index
    %0 = vector.load %arg1[%c0, %c0_0, %c0_1, %c0_2] : memref<1x16x16x8xf32, #tpu.memory_space<vmem>>, vector<1x16x16x8xf32>
    %1 = vector.shape_cast %0 : vector<1x16x16x8xf32> to vector<16x16x8xf32>
    %cst = arith.constant 0.000000e+00 : f32
    %2 = vector.broadcast %cst : f32 to vector<16x1x8xf32>
    %cst_3 = arith.constant 0.000000e+00 : f32
    %3 = vector.broadcast %cst_3 : f32 to vector<1x18x8xf32>
    %4 = tpu.concatenate %2, %1, %2 in 1 : vector<16x1x8xf32>, vector<16x16x8xf32>, vector<16x1x8xf32> -> vector<16x18x8xf32>
    %5 = tpu.concatenate %3, %4, %3 in 0 : vector<1x18x8xf32>, vector<16x18x8xf32>, vector<1x18x8xf32> -> vector<18x18x8xf32>
    %6 = vector.extract_strided_slice %5 {offsets = [0, 0, 0], sizes = [16, 18, 8], strides = [1, 1, 1]} : vector<18x18x8xf32> to vector<16x18x8xf32>
    %7 = vector.extract_strided_slice %6 {offsets = [0, 0, 0], sizes = [16, 16, 8], strides = [1, 1, 1]} : vector<16x18x8xf32> to vector<16x16x8xf32>
    %8 = vector.extract_strided_slice %6 {offsets = [0, 1, 0], sizes = [16, 16, 8], strides = [1, 1, 1]} : vector<16x18x8xf32> to vector<16x16x8xf32>
    %9 = vector.extract_strided_slice %6 {offsets = [0, 2, 0], sizes = [16, 16, 8], strides = [1, 1, 1]} : vector<16x18x8xf32> to vector<16x16x8xf32>
    %10 = tpu.concatenate %7, %8, %9 in 2 : vector<16x16x8xf32>, vector<16x16x8xf32>, vector<16x16x8xf32> -> vector<16x16x24xf32>
    %11 = vector.extract_strided_slice %5 {offsets = [1, 0, 0], sizes = [16, 18, 8], strides = [1, 1, 1]} : vector<18x18x8xf32> to vector<16x18x8xf32>
    %12 = vector.extract_strided_slice %11 {offsets = [0, 0, 0], sizes = [16, 16, 8], strides = [1, 1, 1]} : vector<16x18x8xf32> to vector<16x16x8xf32>
    %13 = vector.extract_strided_slice %11 {offsets = [0, 1, 0], sizes = [16, 16, 8], strides = [1, 1, 1]} : vector<16x18x8xf32> to vector<16x16x8xf32>
    %14 = vector.extract_strided_slice %11 {offsets = [0, 2, 0], sizes = [16, 16, 8], strides = [1, 1, 1]} : vector<16x18x8xf32> to vector<16x16x8xf32>
    %15 = tpu.concatenate %12, %13, %14 in 2 : vector<16x16x8xf32>, vector<16x16x8xf32>, vector<16x16x8xf32> -> vector<16x16x24xf32>
    %16 = vector.extract_strided_slice %5 {offsets = [2, 0, 0], sizes = [16, 18, 8], strides = [1, 1, 1]} : vector<18x18x8xf32> to vector<16x18x8xf32>
    %17 = vector.extract_strided_slice %16 {offsets = [0, 0, 0], sizes = [16, 16, 8], strides = [1, 1, 1]} : vector<16x18x8xf32> to vector<16x16x8xf32>
    %18 = vector.extract_strided_slice %16 {offsets = [0, 1, 0], sizes = [16, 16, 8], strides = [1, 1, 1]} : vector<16x18x8xf32> to vector<16x16x8xf32>
    %19 = vector.extract_strided_slice %16 {offsets = [0, 2, 0], sizes = [16, 16, 8], strides = [1, 1, 1]} : vector<16x18x8xf32> to vector<16x16x8xf32>
    %20 = tpu.concatenate %17, %18, %19 in 2 : vector<16x16x8xf32>, vector<16x16x8xf32>, vector<16x16x8xf32> -> vector<16x16x24xf32>
    %21 = tpu.concatenate %10, %15, %20 in 2 : vector<16x16x24xf32>, vector<16x16x24xf32>, vector<16x16x24xf32> -> vector<16x16x72xf32>
    %22 = vector.shape_cast %21 : vector<16x16x72xf32> to vector<256x72xf32>
    %23 = arith.truncf %22 : vector<256x72xf32> to vector<256x72xbf16>
    %c0_4 = arith.constant 0 : index
    %c0_5 = arith.constant 0 : index
    %24 = vector.load %arg2[%c0_4, %c0_5] : memref<72x14xbf16, #tpu.memory_space<vmem>>, vector<72x14xbf16>
    %cst_6 = arith.constant dense<0.000000e+00> : vector<256x14xf32>
    %25 = tpu.matmul %23, %24, %cst_6 {dimension_numbers = #tpu.dot_dimension_numbers<[1], [0], [0], [1], [0, 0, 1, 1], [], []>} : vector<256x72xbf16>, vector<72x14xbf16>, vector<256x14xf32> -> vector<256x14xf32>
    %c0_7 = arith.constant 0 : index
    %c0_8 = arith.constant 0 : index
    %26 = vector.load %arg3[%c0_7, %c0_8] : memref<1x14xf32, #tpu.memory_space<vmem>>, vector<1x14xf32>
    %27 = vector.broadcast %26 : vector<1x14xf32> to vector<256x14xf32>
    %28 = arith.addf %25, %27 : vector<256x14xf32>
    %c0_9 = arith.constant 0 : index
    %c0_10 = arith.constant 0 : index
    %c0_11 = arith.constant 0 : index
    %29 = vector.load %arg4[%c0_9, %c0_10, %c0_11] : memref<1x256x14xf32, #tpu.memory_space<vmem>>, vector<1x256x14xf32>
    %30 = vector.shape_cast %29 : vector<1x256x14xf32> to vector<256x14xf32>
    %31 = vector.shape_cast %28 : vector<256x14xf32> to vector<1x256x14xf32>
    tpu.vector_store %arg4[%c0_9, %c0_10, %c0_11], %31 {strides = array<i32>} : memref<1x256x14xf32, #tpu.memory_space<vmem>>, vector<1x256x14xf32>,
    return
  }
  func.func @transform_0(%arg0: i32) -> (i32, i32, i32, i32) {
    %c0_i32 = arith.constant 0 : i32
    %c0_i32_0 = arith.constant 0 : i32
    %c0_i32_1 = arith.constant 0 : i32
    %c0_i32_2 = arith.constant 0 : i32
    return %arg0, %c0_i32, %c0_i32_0, %c0_i32_1 : i32, i32, i32, i32
  }
  func.func @transform_1(%arg0: i32) -> (i32, i32) {
    %c0_i32 = arith.constant 0 : i32
    %c0_i32_0 = arith.constant 0 : i32
    %c0_i32_1 = arith.constant 0 : i32
    return %c0_i32, %c0_i32_0 : i32, i32
  }
  func.func @transform_2(%arg0: i32) -> (i32, i32) {
    %c0_i32 = arith.constant 0 : i32
    %c0_i32_0 = arith.constant 0 : i32
    %c0_i32_1 = arith.constant 0 : i32
    return %c0_i32, %c0_i32_0 : i32, i32
  }
  func.func @transform_3(%arg0: i32) -> (i32, i32, i32) {
    %c0_i32 = arith.constant 0 : i32
    %c0_i32_0 = arith.constant 0 : i32
    %c0_i32_1 = arith.constant 0 : i32
    return %arg0, %c0_i32, %c0_i32_0 : i32, i32, i32
  }
}

</mosaic_0001>

<bundles_post_ra>
// kernel: tpu_custom_call.1
= control target key start
LH: loop header
LB: loop body
LE: loop exit
PB: predicated region body
PF: predicated region fallthrough
CT: control target
= control target key end

     0   :  { %s1830_s12 = smov 0   ;;  %s2804_s0 = inlined_call_operand.vmem [shape: f32[2,16,16,8], index: 0, kind: input, shape index: {}]   ;;  %s2805_s1 = inlined_call_operand.vmem [shape: bf16[72,14], index: 1, kind: input, shape index: {}]   ;;  %s2806_s2 = inlined_call_operand.vmem [shape: f32[1,14], index: 2, kind: input, shape index: {}]   ;;  %s2807_s3 = inlined_call_operand.vmem [shape: f32[2,256,14], index: 3, kind: output, shape index: {}]  }
   0x1 LB: > { %s1404_s13 = sadd.s32 4294967295, %s1803_s12   ;;  %p1408_p0 = scmp.ge.s32.totalorder %s1803_s12, 1  ;;  %s1803_s12 = sphi %s1830_s12, %s13_s12  }
   0x2   : > { %p137_p1 = scmp.lt.s32.totalorder %s1803_s12, 3 }
   0x4   : > { %p138_p2 = pnand %p1408_p0, %p137_p1 }
   0x6   : > { %141 = sbr.rel (%p138_p2) target bundleno = 538 (0x21a), region = 32 }
   0xb   : > { %p161_p3 = scmp.lt.s32.totalorder %s1404_s13, 1  ;;  %vm236_vm0 = vcmask 1040384   ;;  %vm396_vm1 = vcmask 1046528   ;;  %v2808_v40 = vmov 0.0   ;;  %s1806_s18 = smov 8   ;;  %vm567_vm2 = vcmask 1045504  }
   0xc   : > { %v397_v41 = vrot.slane %v2808_v40, 1  ;;  %s1807_s19 = smov 16   ;;  %vm738_vm3 = vcmask 64512   ;;  %vm770_vm4 = vcmask 130048   ;;  %s1808_s20 = smov 24   ;;  %vm1223_vm5 = vcmask 1043456  }
   0xd   : > { %s2840_s13 = smov (!%p161_p3, %s1404_s13), 1  ;;  %s1809_s21 = smov 48   ;;  %vm1052_vm6 = vcmask 195584   ;;  %vm1085_vm7 = vcmask 392192   ;;  %vm1174_vm8 = vcmask 588800   ;;  %vm1316_vm9 = vcmask 113664  }
   0xe   : > { %s1447_s14 = sshll.u32 %s2840_s13, 8 }
   0xf   : > { %s1846_s17 = scalar_lea.vmem %s2804_s0, %s1447_s14  ;;  %s2703_s9 = scalar_lea.vmem %s2807_s3, %s1447_s14 }
  0x10   : > { %v178_v0 = vld [vmem:[%s1846_s17 + $0x30] sm:$0xff]  ;;  %v179_v1 = vld [vmem:[%s1846_s17 + $0x38] sm:$0xff]  ;;  %v180_v2 = vld [vmem:[%s1846_s17 + $0x40] sm:$0xff] }
  0x11   : > { %v181_v3 = vld [vmem:[%s1846_s17 + $0x48] sm:$0xff]  ;;  %v246_v4 = vrot.slane %v178_v0, 7  ;;  %v247_v5 = vrot.slane %v179_v1, 7  ;;  %v249_v6 = vrot.slane %v180_v2, 7  ;;  %v174_v7 = vld [vmem:[%s1846_s17 + $0x10] sm:$0xff]  ;;  %v175_v8 = vld [vmem:[%s1846_s17 + $0x18] sm:$0xff] }
  0x12   : > { %v250_v9 = vrot.slane %v181_v3, 7  ;;  %v176_v10 = vld [vmem:[%s1846_s17 + $0x20] sm:$0xff]  ;;  %v177_v11 = vld [vmem:[%s1846_s17 + $0x28] sm:$0xff]  ;;  %v240_v12 = vrot.slane %v174_v7, 7  ;;  %v241_v13 = vrot.slane %v175_v8, 7  ;;  %v182_v31 = vld [vmem:[%s1846_s17 + $0x50] sm:$0xff] }
  0x13   : > { %v1857_v14 = vsel %vm236_vm0, %v246_v4, %v247_v5  ;;  %v1860_v15 = vsel %vm236_vm0, 0.0, %v249_v6  ;;  %v1863_v16 = vsel %vm236_vm0, %v247_v5, 0.0  ;;  %v243_v17 = vrot.slane %v176_v10, 7  ;;  %v172_v25 = vld [vmem:[%s1846_s17] sm:$0xff]  ;;  %v173_v30 = vld [vmem:[%s1846_s17 + $0x8] sm:$0xff]  ;;  %v1887_v32 = vld [vmem:[%s1846_s17 + $0x58] sm:$0xff] }
  0x14   : > { %v1866_v18 = vsel %vm236_vm0, %v249_v6, %v250_v9  ;;  %v415_v19 = vrot.slane %v1857_v14, 1  ;;  %v417_v20 = vrot.slane %v1863_v16, 1  ;;  %v419_v21 = vrot.slane %v1860_v15, 1  ;;  %v186_v62 = vld [vmem:[%s1846_s17 + $0x70] sm:$0xff]  ;;  %v187_v3 = vld [vmem:[%s1846_s17 + $0x78] sm:$0xff]  ;;  %v184_v10 = vld [vmem:[%s1846_s17 + $0x60] sm:$0xff] }
  0x15   : > { %v420_v22 = vrot.slane %v1866_v18, 1  ;;  %v1873_v23 = vsel %vm236_vm0, %v240_v12, %v241_v13  ;;  %v244_v24 = vrot.slane %v177_v11, 7  ;;  %v1878_v27 = vsel %vm236_vm0, 0.0, %v243_v17  ;;  %v185_v11 = vld [vmem:[%s1846_s17 + $0x68] sm:$0xff] }
  0x16   : > { %2820 = vst [vmem:[#allocation2_spill] sm:$0xff] %v1873_v23  ;;  %v418_v26 = vsel %vm396_vm1, %v415_v19, %v417_v20  ;;  %v1881_v28 = vsel %vm236_vm0, %v241_v13, 0.0  ;;  %v405_v29 = vrot.slane %v1873_v23, 1  ;;  %v409_v36 = vrot.slane %v1878_v27, 1 }
  0x17   : > { %v421_v33 = vsel %vm396_vm1, %v419_v21, %v420_v22  ;;  %v1891_v34 = vsel %vm236_vm0, %v243_v17, %v244_v24  ;;  %v407_v35 = vrot.slane %v1881_v28, 1  ;;  %v237_v39 = vrot.slane %v172_v25, 7 }
  0x18   : > { %v1501_v37 = vpack.i.bf16 %v421_v33, %v418_v26  ;;  %v410_v38 = vrot.slane %v1891_v34, 1  ;;  %v238_v43 = vrot.slane %v173_v30, 7  ;;  %v252_v44 = vrot.slane %v182_v31, 7 }
  0x19   : > { %v408_v42 = vsel %vm396_vm1, %v405_v29, %v407_v35  ;;  %v253_v45 = vrot.slane %v1887_v32, 7  ;;  %v1902_v47 = vsel %vm236_vm0, 0.0, %v237_v39  ;;  %v1905_v48 = vsel %vm236_vm0, %v250_v9, 0.0  ;;  %v1949_v9 = vld [vmem:[%s1846_s17 + $0x88] sm:$0xff] }
  0x1a   : > { %1502 = vrot.lane.b32.xlu2 %v1501_v37, %s1806_s18  ;;  %v411_v46 = vsel %vm396_vm1, %v409_v36, %v410_v38  ;;  %2821 = vst [vmem:[#allocation3_spill] sm:$0xff] %v1902_v47  ;;  %v1908_v49 = vsel %vm236_vm0, 0.0, %v246_v4  ;;  %v1911_v51 = vsel %vm236_vm0, %v237_v39, %v238_v43  ;;  %v399_v52 = vrot.slane %v1902_v47, 1  ;;  %v188_v4 = vld [vmem:[%s1846_s17 + $0x80] sm:$0xff] }
  0x1b   : > { %v1491_v50 = vpack.i.bf16 %v411_v46, %v408_v42  ;;  %2822 = vst [vmem:[#allocation4_spill] sm:$0xff] %v1911_v51  ;;  %v1917_v53 = vsel %vm236_vm0, %v252_v44, %v253_v45  ;;  %v400_v54 = vrot.slane %v1911_v51, 1  ;;  %v1921_v55 = vsel %vm236_vm0, 0.0, %v252_v44  ;;  %v192_v42 = vld [vmem:[%s1846_s17 + $0xa0] sm:$0xff] }
  0x1c   : > { %v422_v56 = vrot.slane %v1905_v48, 1  ;;  %v425_v57 = vrot.slane %v1917_v53, 1  ;;  %v424_v58 = vrot.slane %v1921_v55, 1  ;;  %v1928_v59 = vsel %vm236_vm0, %v244_v24, 0.0 }
  0x1d   : > { %1492 = vrot.lane.b32.xlu1 %v1491_v50, %s1806_s18  ;;  %v414_v60 = vrot.slane %v1908_v49, 1  ;;  %v1932_v61 = vsel %vm236_vm0, 0.0, %v240_v12  ;;  %v401_v63 = vsel %vm396_vm1, %v399_v52, %v400_v54  ;;  %v412_v1 = vrot.slane %v1928_v59, 1 }
  0x1e   : > { %2823 = vst [vmem:[#allocation5_spill] sm:$0xff] %v1932_v61  ;;  %v423_v0 = vsel %vm396_vm1, %v420_v22, %v422_v56  ;;  %v1939_v2 = vsel %vm236_vm0, %v238_v43, 0.0  ;;  %v1481_v5 = vpack.i.bf16 %v401_v63, %v397_v41  ;;  %v426_v6 = vsel %vm396_vm1, %v424_v58, %v425_v57 }
  0x1f   : > { %v416_v7 = vsel %vm396_vm1, %v414_v60, %v415_v19  ;;  %v402_v8 = vrot.slane %v1939_v2, 1  ;;  %v1506_v12 = vpack.i.bf16 %v426_v6, %v423_v0  ;;  %v413_v13 = vsel %vm396_vm1, %v410_v38, %v412_v1  ;;  %v193_v60 = vld [vmem:[%s1846_s17 + $0xa8] sm:$0xff]  ;;  %v191_v6 = vld [vmem:[%s1846_s17 + $0x98] sm:$0xff] }
  0x20   : > { %v404_v17 = vrot.slane %v1932_v61, 1  ;;  %v258_v20 = vrot.slane %v186_v62, 7  ;;  %1482 = vrot.lane.b32.xlu0 %v1481_v5, %s1806_s18  ;;  %v1496_v21 = vpack.i.bf16 %v416_v7, %v413_v13  ;;  %v259_v24 = vrot.slane %v187_v3, 7  ;;  %v194_v62 = vld [vmem:[%s1846_s17 + $0xb0] sm:$0xff]  ;;  %v2007_v3 = vld [vmem:[%s1846_s17 + $0xb8] sm:$0xff] }
  0x21   : > { %v403_v22 = vsel %vm396_vm1, %v400_v54, %v402_v8  ;;  %v261_v19 = vrot.slane %v188_v4, 7  ;;  %v262_v26 = vrot.slane %v1949_v9, 7  ;;  %v255_v30 = vrot.slane %v184_v10, 7  ;;  %v190_v5 = vld [vmem:[%s1846_s17 + $0x90] sm:$0xff] }
  0x22   : > { %1507 = vrot.lane.b32.xlu2 %v1506_v12, %s1806_s18  ;;  %v406_v25 = vsel %vm396_vm1, %v404_v17, %v405_v29  ;;  %v256_v31 = vrot.slane %v185_v11, 7  ;;  %v1961_v35 = vsel %vm236_vm0, %v258_v20, %v259_v24  ;;  %v1967_v37 = vsel %vm236_vm0, %v259_v24, 0.0 }
  0x23   : > { %v1486_v33 = vpack.i.bf16 %v406_v25, %v403_v22  ;;  %v1964_v36 = vsel %vm236_vm0, 0.0, %v261_v19  ;;  %2824 = vst [vmem:[#allocation6_spill] sm:$0xff] %v1967_v37  ;;  %v1972_v29 = vsel %vm236_vm0, %v261_v19, %v262_v26  ;;  %v435_v38 = vrot.slane %v1961_v35, 1 }
  0x24   : > { %v437_v39 = vrot.slane %v1967_v37, 1  ;;  %v439_v41 = vrot.slane %v1964_v36, 1  ;;  %v440_v43 = vrot.slane %v1972_v29, 1  ;;  %v1981_v44 = vsel %vm236_vm0, %v255_v30, %v256_v31 }
  0x25   : > { %1497 = vrot.lane.b32.xlu1 %v1496_v21, %s1806_s18  ;;  %v1984_v46 = vsel %vm236_vm0, 0.0, %v258_v20  ;;  %v1987_v50 = vsel %vm236_vm0, %v256_v31, 0.0  ;;  %v430_v54 = vrot.slane %v1981_v44, 1  ;;  %v1999_v0 = vsel %vm236_vm0, 0.0, %v255_v30 }
  0x26   : > { %v438_v52 = vsel %vm396_vm1, %v435_v38, %v437_v39  ;;  %v432_v56 = vrot.slane %v1987_v50, 1  ;;  %v434_v58 = vrot.slane %v1984_v46, 1  ;;  %v441_v63 = vsel %vm396_vm1, %v439_v41, %v440_v43 }
  0x27   : > { %v2004_v1 = vsel %vm236_vm0, %v253_v45, 0.0  ;;  %v267_v4 = vrot.slane %v192_v42, 7  ;;  %v1521_v7 = vpack.i.bf16 %v441_v63, %v438_v52  ;;  %v429_v32 = vrot.slane %v1999_v0, 1  ;;  %v199_v63 = vld [vmem:[%s1846_s17 + $0xd8] sm:$0xff] }
  0x28   : > { %v433_v8 = vsel %vm396_vm1, %v430_v54, %v432_v56  ;;  %v436_v10 = vsel %vm396_vm1, %v434_v58, %v435_v38  ;;  %v427_v11 = vrot.slane %v2004_v1, 1  ;;  %1487 = vrot.lane.b32.xlu0 %v1486_v33, %s1806_s18  ;;  %v268_v13 = vrot.slane %v193_v60, 7 }
  0x29   : > { %v1516_v12 = vpack.i.bf16 %v436_v10, %v433_v8  ;;  %v270_v45 = vrot.slane %v194_v62, 7  ;;  %v271_v20 = vrot.slane %v2007_v3, 7  ;;  %v264_v21 = vrot.slane %v190_v5, 7  ;;  %v198_v62 = vld [vmem:[%s1846_s17 + $0xd0] sm:$0xff]  ;;  %v200_v3 = vld [vmem:[%s1846_s17 + $0xe0] sm:$0xff]  ;;  %v2067_v8 = vld [vmem:[%s1846_s17 + $0xe8] sm:$0xff] }
  0x2a   : > { %1522 = vrot.lane.b32.xlu2 %v1521_v7, %s1806_s18  ;;  %v428_v17 = vsel %vm396_vm1, %v425_v57, %v427_v11  ;;  %v265_v22 = vrot.slane %v191_v6, 7  ;;  %v431_v24 = vsel %vm396_vm1, %v429_v32, %v430_v54  ;;  %v2023_v19 = vsel %vm236_vm0, %v267_v4, %v268_v13 }
  0x2b   : > { %v2026_v25 = vsel %vm236_vm0, 0.0, %v270_v45  ;;  %v2029_v30 = vsel %vm236_vm0, %v268_v13, 0.0  ;;  %v1511_v31 = vpack.i.bf16 %v431_v24, %v428_v17  ;;  %v2032_v57 = vsel %vm236_vm0, %v270_v45, %v271_v20 }
  0x2c   : > { %v450_v33 = vrot.slane %v2023_v19, 1  ;;  %v452_v38 = vrot.slane %v2029_v30, 1  ;;  %v454_v39 = vrot.slane %v2026_v25, 1  ;;  %v455_v41 = vrot.slane %v2032_v57, 1 }
  0x2d   : > { %1517 = vrot.lane.b32.xlu1 %v1516_v12, %s1806_s18  ;;  %v2040_v42 = vsel %vm236_vm0, %v264_v21, %v265_v22  ;;  %v2043_v52 = vsel %vm236_vm0, 0.0, %v267_v4  ;;  %v2047_v56 = vsel %vm236_vm0, %v265_v22, 0.0  ;;  %v2059_v4 = vsel %vm236_vm0, 0.0, %v264_v21 }
  0x2e   : > { %v453_v54 = vsel %vm396_vm1, %v450_v33, %v452_v38  ;;  %v445_v58 = vrot.slane %v2040_v42, 1  ;;  %v449_v60 = vrot.slane %v2043_v52, 1  ;;  %v456_v5 = vsel %vm396_vm1, %v454_v39, %v455_v41  ;;  %v197_v38 = vld [vmem:[%s1846_s17 + $0xc8] sm:$0xff] }
  0x2f   : > { %v447_v6 = vrot.slane %v2047_v56, 1  ;;  %v2064_v7 = vsel %vm236_vm0, %v262_v26, 0.0  ;;  %v1536_v10 = vpack.i.bf16 %v456_v5, %v453_v54  ;;  %v444_v32 = vrot.slane %v2059_v4, 1 }
  0x30   : > { %v451_v11 = vsel %vm396_vm1, %v449_v60, %v450_v33  ;;  %v442_v12 = vrot.slane %v2064_v7, 1  ;;  %1512 = vrot.lane.b32.xlu0 %v1511_v31, %s1806_s18  ;;  %v276_v45 = vrot.slane %v198_v62, 7  ;;  %v277_v9 = vrot.slane %v199_v63, 7  ;;  %v196_v33 = vld [vmem:[%s1846_s17 + $0xc0] sm:$0xff] }
  0x31   : > { %v448_v13 = vsel %vm396_vm1, %v445_v58, %v447_v6  ;;  %v279_v17 = vrot.slane %v200_v3, 7  ;;  %v446_v22 = vsel %vm396_vm1, %v444_v32, %v445_v58  ;;  %v280_v24 = vrot.slane %v2067_v8, 7 }
  0x32   : > { %1537 = vrot.lane.b32.xlu2 %v1536_v10, %s1806_s18  ;;  %v1531_v26 = vpack.i.bf16 %v451_v11, %v448_v13  ;;  %v443_v21 = vsel %vm396_vm1, %v440_v43, %v442_v12  ;;  %v2083_v31 = vsel %vm236_vm0, %v276_v45, %v277_v9  ;;  %v2089_v60 = vsel %vm236_vm0, %v277_v9, 0.0 }
  0x33   : > { %v1526_v39 = vpack.i.bf16 %v446_v22, %v443_v21  ;;  %v2086_v54 = vsel %vm236_vm0, 0.0, %v279_v17  ;;  %v2092_v62 = vsel %vm236_vm0, %v279_v17, %v280_v24  ;;  %v465_v43 = vrot.slane %v2083_v31, 1 }
  0x34   : > { %v467_v58 = vrot.slane %v2089_v60, 1  ;;  %v469_v63 = vrot.slane %v2086_v54, 1  ;;  %v470_v3 = vrot.slane %v2092_v62, 1  ;;  %v273_v5 = vrot.slane %v196_v33, 7 }
  0x35   : > { %1532 = vrot.lane.b32.xlu1 %v1531_v26, %s1806_s18  ;;  %v274_v6 = vrot.slane %v197_v38, 7  ;;  %v2100_v8 = vsel %vm236_vm0, 0.0, %v276_v45  ;;  %v2105_v12 = vsel %vm236_vm0, %v271_v20, 0.0  ;;  %v571_v38 = vrot.slane %v1911_v51, 2 }
  0x36   : > { %v468_v10 = vsel %vm396_vm1, %v465_v43, %v467_v58  ;;  %v464_v11 = vrot.slane %v2100_v8, 1  ;;  %v471_v32 = vsel %vm396_vm1, %v469_v63, %v470_v3  ;;  %v2115_v45 = vsel %vm236_vm0, 0.0, %v273_v5  ;;  %v202_v63 = vld [vmem:[%s1846_s17 + $0xf0] sm:$0xff] }
  0x37   : > { %v2109_v13 = vsel %vm236_vm0, %v273_v5, %v274_v6  ;;  %v2112_v9 = vsel %vm236_vm0, %v274_v6, 0.0  ;;  %v1551_v17 = vpack.i.bf16 %v471_v32, %v468_v10  ;;  %v457_v22 = vrot.slane %v2105_v12, 1 }
  0x38   : > { %v460_v26 = vrot.slane %v2109_v13, 1  ;;  %v462_v21 = vrot.slane %v2112_v9, 1  ;;  %v466_v20 = vsel %vm396_vm1, %v464_v11, %v465_v43  ;;  %1527 = vrot.lane.b32.xlu0 %v1526_v39, %s1806_s18  ;;  %v459_v33 = vrot.slane %v2115_v45, 1  ;;  %v203_v39 = vld [vmem:[%s1846_s17 + $0xf8] sm:$0xff] }
  0x39   : > { %v573_v58 = vrot.slane %v1939_v2, 2  ;;  %v575_v6 = vrot.slane %v1932_v61, 2  ;;  %v576_v10 = vrot.slane %v1873_v23, 2  ;;  %v570_v43 = vrot.slane %v1902_v47, 2 }
  0x3a   : > { %1552 = vrot.lane.b32.xlu2 %v1551_v17, %s1806_s18  ;;  %v463_v5 = vsel %vm396_vm1, %v460_v26, %v462_v21  ;;  %v458_v32 = vsel %vm396_vm1, %v455_v41, %v457_v22  ;;  %v461_v40 = vsel %vm396_vm1, %v459_v33, %v460_v26  ;;  %v2825_v51 = vmov 0.0  }
  0x3b   : > { %v1546_v11 = vpack.i.bf16 %v466_v20, %v463_v5  ;;  %v574_v2 = vsel %vm567_vm2, %v571_v38, %v573_v58  ;;  %v568_v17 = vrot.slane %v2825_v51, 2  ;;  %v1541_v37 = vpack.i.bf16 %v461_v40, %v458_v32 }
  0x3c   : > { %v577_v21 = vsel %vm567_vm2, %v575_v6, %v576_v10  ;;  %v282_v61 = vrot.slane %v202_v63, 7  ;;  %v572_v47 = vsel %vm567_vm2, %v570_v43, %v571_v38  ;;  %v283_v20 = vrot.slane %v203_v39, 7 }
  0x3d   : > { %1547 = vrot.lane.b32.xlu1 %v1546_v11, %s1806_s18  ;;  %v1566_v23 = vpack.i.bf16 %v577_v21, %v574_v2  ;;  %v2142_v5 = vsel %vm236_vm0, %v280_v24, 0.0  ;;  %v611_v51 = vrot.slane %v1972_v29, 2  ;;  %v613_v40 = vrot.slane %v2064_v7, 2 }
  0x3e   : > { %v2145_v41 = vsel %vm236_vm0, 0.0, %v282_v61  ;;  %v472_v26 = vrot.slane %v2142_v5, 1  ;;  %v2151_v22 = vsel %vm236_vm0, %v282_v61, %v283_v20  ;;  %v630_v38 = vrot.slane %v2115_v45, 2 }
  0x3f   : > { %v804_v33 = vrot.slane %v2145_v41, 1  ;;  %v631_v58 = vrot.slane %v2109_v13, 2  ;;  %v805_v24 = vrot.slane %v2151_v22, 1  ;;  %v1561_v63 = vpack.i.bf16 %v572_v47, %v568_v17 }
  0x40   : > { %1542 = vrot.lane.b32.xlu0 %v1541_v37, %s1806_s18  ;;  %v473_v6 = vsel %vm396_vm1, %v470_v3, %v472_v26  ;;  %v581_v61 = vrot.slane %v1891_v34, 2  ;;  %v583_v43 = vrot.slane %v1928_v59, 2  ;;  %v610_v39 = vrot.slane %v1964_v36, 2 }
  0x41   : > { %v806_v7 = vsel %vm396_vm1, %v804_v33, %v805_v24  ;;  %v614_v11 = vsel %vm567_vm2, %v611_v51, %v613_v40  ;;  %v632_v32 = vsel %vm567_vm2, %v630_v38, %v631_v58  ;;  %v578_v37 = vrot.slane %v1881_v28, 2 }
  0x42   : > { %1567 = vrot.lane.b32.xlu2 %v1566_v23, %s1807_s19  ;;  %v1556_v47 = vpack.i.bf16 %v806_v7, %v473_v6  ;;  %v1581_v3 = vpack.i.bf16 %v632_v32, %v614_v11  ;;  %v584_v23 = vsel %vm567_vm2, %v581_v61, %v583_v43  ;;  %v612_v2 = vsel %vm567_vm2, %v610_v39, %v611_v51 }
  0x43   : > { %v580_v17 = vrot.slane %v1878_v27, 2  ;;  %v590_v59 = vrot.slane %v1860_v15, 2  ;;  %v591_v21 = vrot.slane %v1866_v18, 2  ;;  %v636_v26 = vrot.slane %v2083_v31, 2 }
  0x44   : > { %v638_v40 = vrot.slane %v2089_v60, 2  ;;  %v1576_v28 = vpack.i.bf16 %v612_v2, %v584_v23  ;;  %v579_v33 = vsel %vm567_vm2, %v576_v10, %v578_v37  ;;  %v616_v51 = vrot.slane %v2040_v42, 2 }
  0x45   : > { %1562 = vrot.lane.b32.xlu1 %v1561_v63, %s1807_s19  ;;  %v582_v38 = vsel %vm567_vm2, %v580_v17, %v581_v61  ;;  %v618_v63 = vrot.slane %v2047_v56, 2  ;;  %v635_v6 = vrot.slane %v2100_v8, 2  ;;  %v592_v7 = vsel %vm567_vm2, %v590_v59, %v591_v21 }
  0x46   : > { %v639_v43 = vsel %vm567_vm2, %v636_v26, %v638_v40  ;;  %v2185_v60 = vsel %vm236_vm0, %v283_v20, 0.0  ;;  %v1571_v10 = vpack.i.bf16 %v582_v38, %v579_v33  ;;  %v615_v39 = vrot.slane %v2059_v4, 2 }
  0x47   : > { %v633_v61 = vrot.slane %v2112_v9, 2  ;;  %v807_v11 = vrot.slane %v2185_v60, 1  ;;  %v1596_v32 = vpack.i.bf16 %v592_v7, %v639_v43  ;;  %v619_v56 = vsel %vm567_vm2, %v616_v51, %v618_v63 }
  0x48   : > { %1557 = vrot.lane.b32.xlu0 %v1556_v47, %s1806_s18  ;;  %v637_v37 = vsel %vm567_vm2, %v635_v6, %v636_v26  ;;  %v621_v47 = vrot.slane %v2023_v19, 2  ;;  %v640_v20 = vrot.slane %v2086_v54, 2  ;;  %v641_v23 = vrot.slane %v2092_v62, 2 }
  0x49   : > { %v808_v2 = vsel %vm396_vm1, %v805_v24, %v807_v11  ;;  %v1591_v9 = vpack.i.bf16 %v637_v37, %v619_v56  ;;  %v617_v17 = vsel %vm567_vm2, %v615_v39, %v616_v51  ;;  %v634_v59 = vsel %vm567_vm2, %v631_v58, %v633_v61 }
  0x4a   : > { %1582 = vrot.lane.b32.xlu2 %v1581_v3, %s1807_s19  ;;  %v623_v3 = vrot.slane %v2029_v30, 2  ;;  %v596_v26 = vrot.slane %v1917_v53, 2  ;;  %v598_v40 = vrot.slane %v2004_v1, 2  ;;  %v620_v30 = vrot.slane %v2043_v52, 2 }
  0x4b   : > { %v642_v33 = vsel %vm567_vm2, %v640_v20, %v641_v23  ;;  %v1586_v24 = vpack.i.bf16 %v617_v17, %v634_v59  ;;  %v593_v38 = vrot.slane %v1905_v48, 2  ;;  %v595_v6 = vrot.slane %v1921_v55, 2 }
  0x4c   : > { %v599_v63 = vsel %vm567_vm2, %v596_v26, %v598_v40  ;;  %v622_v58 = vsel %vm567_vm2, %v620_v30, %v621_v47  ;;  %v601_v43 = vrot.slane %v1981_v44, 2  ;;  %v603_v48 = vrot.slane %v1987_v50, 2 }
  0x4d   : > { %1577 = vrot.lane.b32.xlu1 %v1576_v28, %s1807_s19  ;;  %v624_v28 = vsel %vm567_vm2, %v621_v47, %v623_v3  ;;  %v1606_v1 = vpack.i.bf16 %v622_v58, %v599_v63  ;;  %v594_v7 = vsel %vm567_vm2, %v591_v21, %v593_v38  ;;  %v625_v39 = vrot.slane %v2026_v25, 2 }
  0x4e   : > { %v1611_v51 = vpack.i.bf16 %v642_v33, %v624_v28  ;;  %v626_v61 = vrot.slane %v2032_v57, 2  ;;  %v588_v11 = vrot.slane %v1863_v16, 2  ;;  %v600_v56 = vrot.slane %v1999_v0, 2 }
  0x4f   : > { %v643_v21 = vrot.slane %v2142_v5, 2  ;;  %v586_v37 = vrot.slane %v1857_v14, 2  ;;  %v604_v47 = vsel %vm567_vm2, %v601_v43, %v603_v48  ;;  %v605_v50 = vrot.slane %v1984_v46, 2 }
  0x50   : > { %1572 = vrot.lane.b32.xlu0 %v1571_v10, %s1807_s19  ;;  %v597_v10 = vsel %vm567_vm2, %v595_v6, %v596_v26  ;;  %v627_v3 = vsel %vm567_vm2, %v625_v39, %v626_v61  ;;  %v606_v20 = vrot.slane %v1961_v35, 2  ;;  %v818_v16 = vrot.slane %v2185_v60, 2  ;;  %v2826_v6 = vld [vmem:[#allocation6_spill] sm:$0xff] }
  0x51   : > { %v602_v17 = vsel %vm567_vm2, %v600_v56, %v601_v43  ;;  %v644_v59 = vsel %vm567_vm2, %v641_v23, %v643_v21  ;;  %v589_v5 = vsel %vm567_vm2, %v586_v37, %v588_v11  ;;  %v585_v40 = vrot.slane %v1908_v49, 2 }
  0x52   : > { %1597 = vrot.lane.b32.xlu2 %v1596_v32, %s1807_s19  ;;  %v1601_v32 = vpack.i.bf16 %v597_v10, %v594_v7  ;;  %v607_v26 = vsel %vm567_vm2, %v605_v50, %v606_v20  ;;  %v816_v30 = vrot.slane %v2151_v22, 2  ;;  %v1616_v28 = vpack.i.bf16 %v602_v17, %v644_v59 }
  0x53   : > { %v1636_v33 = vpack.i.bf16 %v607_v26, %v589_v5  ;;  %v587_v60 = vsel %vm567_vm2, %v585_v40, %v586_v37  ;;  %v628_v23 = vrot.slane %v2105_v12, 2 }
  0x55   : > { %1592 = vrot.lane.b32.xlu1 %v1591_v9, %s1807_s19  ;;  %v1621_v9 = vpack.i.bf16 %v627_v3, %v604_v47 }
  0x58   : > { %1587 = vrot.lane.b32.xlu0 %v1586_v24, %s1807_s19  ;;  %v819_v24 = vsel %vm567_vm2, %v816_v30, %v818_v16 }
  0x59   : > { %v1631_v38 = vpack.i.bf16 %v587_v60, %v819_v24 }
  0x5a   : > { %1612 = vrot.lane.b32.xlu2 %v1611_v51, %s1807_s19  ;;  %v629_v51 = vsel %vm567_vm2, %v626_v61, %v628_v23 }
  0x5d   : > { %1607 = vrot.lane.b32.xlu1 %v1606_v1, %s1807_s19  ;;  %v608_v1 = vrot.slane %v2826_v6, 2 }
  0x5f   : > { %v609_v12 = vsel %vm567_vm2, %v606_v20, %v608_v1 }
  0x60   : > { %1602 = vrot.lane.b32.xlu0 %v1601_v32, %s1807_s19 }
  0x62   : > { %811 = vrot.lane.b32.xlu2 %v808_v2, %s1806_s18  ;;  %v815_v2 = vrot.slane %v2145_v41, 2 }
  0x64   : > { %v817_v63 = vsel %vm567_vm2, %v815_v2, %v816_v30 }
  0x65   : > { %1622 = vrot.lane.b32.xlu1 %v1621_v9, %s1807_s19  ;;  %v1626_v58 = vpack.i.bf16 %v817_v63, %v629_v51 }
  0x68   : > { %1617 = vrot.lane.b32.xlu0 %v1616_v28, %s1807_s19 }
  0x6a   : > { %1637 = vrot.lane.b32.xlu2 %v1636_v33, %s1807_s19 }
  0x6d   : > { %1632 = vrot.lane.b32.xlu1 %v1631_v38, %s1807_s19 }
  0x70   : > { %1627 = vrot.lane.b32.xlu0 %v1626_v58, %s1807_s19 }
  0x74   : > { %v2252_v7 = vpop.permute.xlu2 %1502 }
  0x78   : > { %677 = vrot.lane.b32.xlu0 %v609_v12, %s1807_s19 }
  0x7c   : > { %v2254_v43 = vpop.permute.xlu2 %1507 }
  0x84   : > { %v2258_v48 = vpop.permute.xlu2 %1522 }
  0x85   : > { %v1525_v33 = vunpack.i.h.bf16 %v2258_v48 }
  0x87   : > { %v756_v38 = vsel %vm738_vm3, %v1964_v36, %v1525_v33 }
  0x8c   : > { %v2266_v32 = vpop.permute.xlu2 %1537 }
  0x8f   : > { %v2256_v10 = vpop.permute.xlu1 %1492 }
  0x92   : > { %v2260_v39 = vpop.permute.xlu0 %1482 }
  0x93   : > { %v1484_v9 = vunpack.i.l.bf16 %v2260_v39 }
  0x94   : > { %v2272_v37 = vpop.permute.xlu2 %1552 }
  0x95   : > { %v739_v5 = vsel %vm738_vm3, 0.0, %v1484_v9  ;;  %v1554_v58 = vunpack.i.l.bf16 %v2272_v37 }
  0x97   : > { %v2262_v61 = vpop.permute.xlu1 %1497  ;;  %v767_v36 = vsel %vm738_vm3, %v2083_v31, %v1554_v58  ;;  %v1494_v31 = vunpack.i.l.bf16 %v2256_v10 }
  0x9a   : > { %v2264_v11 = vpop.permute.xlu0 %1487 }
  0x9c   : > { %v2276_v20 = vpop.permute.xlu2 %1567 }
  0x9f   : > { %v2268_v56 = vpop.permute.xlu1 %1517 }
  0xa2   : > { %v2270_v21 = vpop.permute.xlu0 %1512 }
  0xa4   : > { %v1583_v40 = vpop.permute.xlu2 %1582 }
  0xa5   : > { %v1584_v60 = vunpack.i.l.bf16 %v1583_v40 }
  0xa7   : > { %v2274_v47 = vpop.permute.xlu1 %1532 }
  0xaa   : > { %v1528_v3 = vpop.permute.xlu0 %1527 }
  0xab   : > { %v1529_v30 = vunpack.i.l.bf16 %v1528_v3 }
  0xac   : > { %v1598_v12 = vpop.permute.xlu2 %1597 }
  0xad   : > { %v757_v24 = vsel %vm738_vm3, %v1972_v29, %v1529_v30  ;;  %v1599_v9 = vunpack.i.l.bf16 %v1598_v12 }
  0xae   : > { %v2302_v63 = vsel %vm770_vm4, %v757_v24, %v1584_v60  ;;  %v1530_v24 = vunpack.i.h.bf16 %v1528_v3 }
  0xaf   : > { %v1548_v50 = vpop.permute.xlu1 %1547  ;;  %2828 = vst [vmem:[#allocation7_spill] sm:$0xff] %v2302_v63 }
  0xb0   : > { %v1550_v1 = vunpack.i.h.bf16 %v1548_v50 }
  0xb2   : > { %v2278_v16 = vpop.permute.xlu0 %1542 }
  0xb7   : > { %v2281_v17 = vpop.permute.xlu1 %1562 }
  0xb8   : > { %v1564_v59 = vunpack.i.l.bf16 %v2281_v17 }
  0xba   : > { %v2286_v26 = vsel %vm770_vm4, %v739_v5, %v1564_v59  ;;  %v2288_v28 = vpop.permute.xlu0 %1557  ;;  %v1534_v59 = vunpack.i.l.bf16 %v2274_v47  ;;  %v1545_v5 = vunpack.i.h.bf16 %v2278_v16 }
  0xbc   : > { %v759_v58 = vsel %vm738_vm3, %v2040_v42, %v1534_v59 }
  0xbf   : > { %v2293_v23 = vpop.permute.xlu1 %1577 }
  0xc0   : > { %v1580_v2 = vunpack.i.h.bf16 %v2293_v23 }
  0xc2   : > { %v2299_v51 = vsel %vm770_vm4, %v756_v38, %v1580_v2  ;;  %v2305_v6 = vpop.permute.xlu0 %1572  ;;  %v766_v2 = vsel %vm738_vm3, %v2100_v8, %v1550_v1  ;;  %v1549_v38 = vunpack.i.l.bf16 %v1548_v50 }
  0xc3   : > { %2827 = vst [vmem:[#allocation6_spill] sm:$0xff] %v2299_v51  ;;  %v1641_v29 = vpack.i.bf16 %v2302_v63, %v2299_v51  ;;  %v1585_v63 = vunpack.i.h.bf16 %v1583_v40  ;;  %v1574_v50 = vunpack.i.l.bf16 %v2305_v6 }
  0xc4   : > { %v765_v42 = vsel %vm738_vm3, %v2109_v13, %v1549_v38 }
  0xc5   : > { %1642 = vrot.lane.b32.xlu1 %v1641_v29, %s1808_s20  ;;  %v2320_v29 = vsel %vm770_vm4, %v767_v36, %v1599_v9  ;;  %v1490_v9 = vunpack.i.h.bf16 %v2264_v11  ;;  %v758_v36 = vsel %vm738_vm3, %v2059_v4, %v1530_v24  ;;  %v1485_v24 = vunpack.i.h.bf16 %v2260_v39 }
  0xc6   : > { %v1489_v39 = vunpack.i.l.bf16 %v2264_v11 }
  0xc7   : > { %v1593_v30 = vpop.permute.xlu1 %1592 }
  0xc8   : > { %v1595_v33 = vunpack.i.h.bf16 %v1593_v30  ;;  %v1594_v60 = vunpack.i.l.bf16 %v1593_v30  ;;  %v764_v30 = vsel %vm738_vm3, %v2115_v45, %v1545_v5  ;;  %v1570_v45 = vunpack.i.h.bf16 %v2276_v20 }
  0xc9   : > { %v2341_v59 = vsel %vm770_vm4, %v764_v30, %v1585_v63  ;;  %v1565_v63 = vunpack.i.h.bf16 %v2281_v17  ;;  %v1505_v30 = vunpack.i.h.bf16 %v2252_v7  ;;  %v1569_v17 = vunpack.i.l.bf16 %v2276_v20 }
  0xca   : > { %v2317_v51 = vsel %vm770_vm4, %v766_v2, %v1595_v33  ;;  %v1588_v3 = vpop.permute.xlu0 %1587  ;;  %v2331_v33 = vsel %vm770_vm4, %v759_v58, %v1594_v60  ;;  %v2830_v2 = vld [vmem:[#allocation2_spill] sm:$0xff] }
  0xcb   : > { %2829 = vst [vmem:[#allocation8_spill] sm:$0xff] %v2317_v51  ;;  %v1656_v8 = vpack.i.bf16 %v2320_v29, %v2317_v51  ;;  %v1590_v40 = vunpack.i.h.bf16 %v1588_v3  ;;  %v1589_v1 = vunpack.i.l.bf16 %v1588_v3  ;;  %v743_v4 = vsel %vm738_vm3, %v2830_v2, %v1494_v31 }
  0xcc   : > { %v2360_v58 = vsel %vm770_vm4, %v743_v4, %v1574_v50  ;;  %v1509_v3 = vunpack.i.l.bf16 %v2254_v43  ;;  %v1600_v50 = vunpack.i.h.bf16 %v1598_v12  ;;  %v748_v51 = vsel %vm738_vm3, %v1860_v15, %v1505_v30  ;;  %v2833_v12 = vld [vmem:[#allocation4_spill] sm:$0xff] }
  0xcd   : > { %1657 = vrot.lane.b32.xlu1 %v1656_v8, %s1809_s21  ;;  %v2344_v5 = vsel %vm770_vm4, %v765_v42, %v1589_v1  ;;  %v2347_v60 = vsel %vm770_vm4, %v758_v36, %v1590_v40  ;;  %v2831_v40 = vld [vmem:[#allocation5_spill] sm:$0xff]  ;;  %v2367_v1 = vpop.permute.xlu2 %1612  ;;  %v2832_v42 = vld [vmem:[#allocation3_spill] sm:$0xff]  ;;  %v1510_v15 = vunpack.i.h.bf16 %v2254_v43  ;;  %v1514_v30 = vunpack.i.l.bf16 %v2270_v21 }
  0xce   : > { %v2354_v13 = vpack.i.bf16 %v2344_v5, %v2341_v59  ;;  %v1651_v38 = vpack.i.bf16 %v2331_v33, %v2347_v60  ;;  %v742_v31 = vsel %vm738_vm3, %v2831_v40, %v1490_v9  ;;  %v740_v2 = vsel %vm738_vm3, %v2832_v42, %v1485_v24 }
  0xcf   : > { %v2374_v36 = vsel %vm770_vm4, %v742_v31, %v1570_v45  ;;  %v2381_v40 = vsel %vm770_vm4, %v740_v2, %v1565_v63  ;;  %v749_v20 = vsel %vm738_vm3, %v1866_v18, %v1509_v3  ;;  %v741_v45 = vsel %vm738_vm3, %v2833_v12, %v1489_v39  ;;  %v1608_v31 = vpop.permute.xlu1 %1607 }
  0xd0   : > { %1647 = vrot.lane.b32.xlu2 %v2354_v13, %s1808_s20  ;;  %1652 = vrot.lane.b32.xlu0 %v1651_v38, %s1809_s21  ;;  %v1671_v11 = vpack.i.bf16 %v2360_v58, %v2374_v36  ;;  %v2391_v24 = vsel %vm770_vm4, %v748_v51, %v1600_v50  ;;  %v2397_v63 = vsel %vm770_vm4, %v741_v45, %v1569_v17  ;;  %v1609_v39 = vunpack.i.l.bf16 %v1608_v31 }
  0xd1   : > { %v1661_v3 = vpack.i.bf16 %v2397_v63, %v2381_v40  ;;  %v750_v51 = vsel %vm738_vm3, %v1921_v55, %v1510_v15  ;;  %v751_v43 = vsel %vm738_vm3, %v1917_v53, %v1514_v30  ;;  %v1559_v12 = vunpack.i.l.bf16 %v2288_v28 }
  0xd2   : > { %v1603_v4 = vpop.permute.xlu0 %1602  ;;  %v1610_v45 = vunpack.i.h.bf16 %v1608_v31  ;;  %v1539_v15 = vunpack.i.l.bf16 %v2266_v32  ;;  %v1555_v30 = vunpack.i.h.bf16 %v2272_v37  ;;  %v1515_v31 = vunpack.i.h.bf16 %v2270_v21 }
  0xd3   : > { %v1604_v9 = vunpack.i.l.bf16 %v1603_v4  ;;  %v1605_v2 = vunpack.i.h.bf16 %v1603_v4  ;;  %v1535_v4 = vunpack.i.h.bf16 %v2274_v47  ;;  %v1519_v47 = vunpack.i.l.bf16 %v2268_v56 }
  0xd4   : > { %v769_v37 = vsel %vm738_vm3, %v2092_v62, %v1559_v12  ;;  %v1495_v21 = vunpack.i.h.bf16 %v2256_v10  ;;  %v1579_v10 = vunpack.i.l.bf16 %v2293_v23 }
  0xd5   : > { %1672 = vrot.lane.b32.xlu1 %v1671_v11, %s1809_s21  ;;  %v2394_v42 = vsel %vm770_vm4, %v749_v20, %v1604_v9  ;;  %v2411_v17 = vpop.permute.xlu2 %811  ;;  %v2414_v9 = vsel %vm770_vm4, %v750_v51, %v1605_v2  ;;  %v2417_v20 = vsel %vm770_vm4, %v751_v43, %v1609_v39  ;;  %v1614_v39 = vunpack.i.l.bf16 %v2367_v1 }
  0xd6   : > { %v1666_v18 = vpack.i.bf16 %v2394_v42, %v2391_v24  ;;  %2834 = vst [vmem:[#allocation2_spill] sm:$0xff] %v2414_v9  ;;  %v1676_v55 = vpack.i.bf16 %v2417_v20, %v2414_v9  ;;  %v760_v2 = vsel %vm738_vm3, %v2043_v52, %v1535_v4  ;;  %v768_v52 = vsel %vm738_vm3, %v2086_v54, %v1555_v30 }
  0xd7   : > { %v1499_v4 = vunpack.i.l.bf16 %v2262_v61  ;;  %v753_v12 = vsel %vm738_vm3, %v1981_v44, %v1519_v47  ;;  %v752_v54 = vsel %vm738_vm3, %v1999_v0, %v1515_v31  ;;  %v744_v0 = vsel %vm738_vm3, %v1878_v27, %v1495_v21 }
  0xd8   : > { %1667 = vrot.lane.b32.xlu0 %v1666_v18, %s1808_s20  ;;  %1662 = vrot.lane.b32.xlu2 %v1661_v3, %s1808_s20  ;;  %v1623_v18 = vpop.permute.xlu1 %1622  ;;  %v1615_v3 = vunpack.i.h.bf16 %v2367_v1  ;;  %v761_v1 = vsel %vm738_vm3, %v2023_v19, %v1539_v15 }
  0xd9   : > { %v2459_v19 = vsel %vm770_vm4, %v761_v1, %v1614_v39  ;;  %v745_v23 = vsel %vm738_vm3, %v1891_v34, %v1499_v4 }
  0xda   : > { %v1618_v50 = vpop.permute.xlu0 %1617  ;;  %v2488_v31 = vsel %vm770_vm4, %v745_v23, %v1579_v10 }
  0xdb   : > { %v1619_v53 = vunpack.i.l.bf16 %v1618_v50  ;;  %v1620_v43 = vunpack.i.h.bf16 %v1618_v50  ;;  %v1520_v50 = vunpack.i.h.bf16 %v2268_v56 }
  0xdd   : > { %1687 = vrot.lane.b32.xlu1 %v1656_v8, %s1808_s20  ;;  %v1524_v8 = vunpack.i.l.bf16 %v2258_v48  ;;  %v2438_v9 = vsel %vm770_vm4, %v769_v37, %v1619_v53  ;;  %v2441_v48 = vsel %vm770_vm4, %v760_v2, %v1610_v45  ;;  %v2449_v62 = vpop.permute.xlu2 %1637  ;;  %v2456_v45 = vsel %vm770_vm4, %v768_v52, %v1615_v3 }
  0xde   : > { %v1696_v53 = vpack.i.bf16 %v2438_v9, %v2456_v45  ;;  %v1691_v56 = vpack.i.bf16 %v2459_v19, %v2441_v48  ;;  %v1640_v44 = vunpack.i.h.bf16 %v2449_v62  ;;  %v2471_v15 = vsel %vm770_vm4, %v752_v54, %v1620_v43 }
  0xdf   : > { %v754_v47 = vsel %vm738_vm3, %v1984_v46, %v1520_v50  ;;  %v1544_v3 = vunpack.i.l.bf16 %v2278_v16  ;;  %v1540_v46 = vunpack.i.h.bf16 %v2266_v32  ;;  %v1560_v52 = vunpack.i.h.bf16 %v2288_v28 }
  0xe0   : > { %1682 = vrot.lane.b32.xlu0 %v1651_v38, %s1808_s20  ;;  %1677 = vrot.lane.b32.xlu2 %v1676_v55, %s1809_s21  ;;  %v1624_v38 = vunpack.i.l.bf16 %v1623_v18  ;;  %v1500_v28 = vunpack.i.h.bf16 %v2262_v61 }
  0xe1   : > { %v762_v21 = vsel %vm738_vm3, %v2026_v25, %v1540_v46  ;;  %v827_v25 = vsel %vm738_vm3, %v2151_v22, %v2411_v17  ;;  %v1639_v22 = vunpack.i.l.bf16 %v2449_v62 }
  0xe2   : > { %v1628_v51 = vpop.permute.xlu0 %1627  ;;  %v2474_v30 = vsel %vm770_vm4, %v753_v12, %v1624_v38  ;;  %v763_v38 = vsel %vm738_vm3, %v2032_v57, %v1544_v3  ;;  %v1633_v57 = vpop.permute.xlu1 %1632  ;;  %v2836_v3 = vld [vmem:[#allocation7_spill] sm:$0xff] }
  0xe3   : > { %v1716_v2 = vpack.i.bf16 %v2474_v30, %v2471_v15  ;;  %v1629_v37 = vunpack.i.l.bf16 %v1628_v51  ;;  %v1634_v4 = vunpack.i.l.bf16 %v1633_v57  ;;  %v1630_v50 = vunpack.i.h.bf16 %v1628_v51 }
  0xe4   : > { %v1635_v10 = vunpack.i.h.bf16 %v1633_v57 }
  0xe5   : > { %1702 = vrot.lane.b32.xlu1 %v1671_v11, %s1808_s20  ;;  %v1575_v11 = vunpack.i.h.bf16 %v2305_v6  ;;  %v755_v6 = vsel %vm738_vm3, %v1961_v35, %v1524_v8  ;;  %v2499_v35 = vsel %vm770_vm4, %v754_v47, %v1640_v44  ;;  %v1625_v8 = vunpack.i.h.bf16 %v1623_v18  ;;  %v1450_v47 = vld [vmem:[%s2805_s1 + $0x8] sm:$0xff] }
  0xe6   : > { %v2510_v1 = vsel %vm770_vm4, %v763_v38, %v1629_v37  ;;  %v829_v54 = vsel %vm770_vm4, %v827_v25, %v1634_v4 }
  0xe7   : > { %v2496_v34 = vsel %vm770_vm4, %v744_v0, %v1575_v11  ;;  %v2517_v32 = vsel %vm770_vm4, %v762_v21, %v1625_v8  ;;  %v1504_v11 = vunpack.i.l.bf16 %v2252_v7 }
  0xe8   : > { %1697 = vrot.lane.b32.xlu0 %v1696_v53, %s1809_s21  ;;  %1692 = vrot.lane.b32.xlu2 %v1691_v56, %s1809_s21  ;;  %v1711_v43 = vpack.i.bf16 %v2488_v31, %v2496_v34  ;;  %v1731_v18 = vpack.i.bf16 %v2510_v1, %v2517_v32 }
  0xea   : > { %v678_v39 = vpop.permute.xlu0 %677 }
  0xeb   : > { %v2493_v27 = vsel %vm770_vm4, %v755_v6, %v678_v39  ;;  %v1452_v6 = vld [vmem:[%s2805_s1 + $0x18] sm:$0xff]  ;;  %v1449_v39 = vld [vmem:[%s2805_s1] sm:$0xff] }
  0xec   : > { %v1756_v16 = vpack.i.bf16 %v2493_v27, %v2499_v35 }
  0xed   : > { %1717 = vrot.lane.b32.xlu1 %v1716_v2, %s1809_s21 }
  0xf0   : > { %1712 = vrot.lane.b32.xlu0 %v1711_v43, %s1809_s21  ;;  %1707 = vrot.lane.b32.xlu2 %v1676_v55, %s1808_s20  ;;  %v826_v55 = vsel %vm738_vm3, %v2145_v41, %v1560_v52  ;;  %v746_v41 = vsel %vm738_vm3, %v1908_v49, %v1500_v28  ;;  %v1776_v49 = vpack.i.bf16 %v2391_v24, %v2286_v26 }
  0xf1   : > { %v828_v12 = vsel %vm770_vm4, %v826_v55, %v1630_v50  ;;  %v2541_v17 = vsel %vm770_vm4, %v746_v41, %v1635_v10 }
  0xf2   : > { %v1736_v51 = vpack.i.bf16 %v829_v54, %v828_v12 }
  0xf5   : > { %1732 = vrot.lane.b32.xlu1 %v1731_v18, %s1809_s21 }
  0xf8   : > { %1727 = vrot.lane.b32.xlu0 %v1696_v53, %s1808_s20  ;;  %1722 = vrot.lane.b32.xlu2 %v1691_v56, %s1808_s20  ;;  %v747_v53 = vsel %vm738_vm3, %v1857_v14, %v1504_v11  ;;  %v1142_v14 = vld [vmem:[%s2805_s1 + $0x20] sm:$0xf] }
  0xf9   : > { %v2547_v61 = vsel %vm770_vm4, %v747_v53, %v1639_v22  ;;  %v1164_v62 = vunpack.c.l.b16 %v1142_v14  ;;  %v2835_v56 = vld [vmem:[#allocation6_spill] sm:$0xff] }
  0xfa   : > { %v1751_v7 = vpack.i.bf16 %v2547_v61, %v2541_v17  ;;  %v1791_v44 = vpack.i.bf16 %v2835_v56, %v2394_v42 }
  0xfb   : > { %v1169_v0 = vpack.c.b16 %v1164_v62, %v1164_v62 }
  0xfd   : > { %1747 = vrot.lane.b32.xlu1 %v1716_v2, %s1808_s20  ;;  %v1225_v23 = vsel %vm1223_vm5, %v1169_v0, 0 }
  0xfe   : > { %1454 = vmatpush.bf16.msra.mxu2 %v1225_v23  ;;  %1455 = vmatpush.bf16.msra.mxu3 %v1225_v23 }
  0xff   : > { %1230 = vmatpush.bf16.msra.mxu0 %v1225_v23  ;;  %1453 = vmatpush.bf16.msra.mxu1 %v1225_v23 }
 0x100   : > { %1742 = vrot.lane.b32.xlu0 %v1711_v43, %s1808_s20  ;;  %1737 = vrot.lane.b32.xlu2 %v1736_v51, %s1809_s21 }
 0x102   : > { %1457 = vmatpush.bf16.msra.mxu2 %v1452_v6  ;;  %1458 = vmatpush.bf16.msra.mxu3 %v1452_v6 }
 0x103   : > { %1231 = vmatpush.bf16.msra.mxu0 %v1452_v6  ;;  %1456 = vmatpush.bf16.msra.mxu1 %v1452_v6 }
 0x105   : > { %1762 = vrot.lane.b32.xlu1 %v1731_v18, %s1808_s20 }
 0x108   : > { %1757 = vrot.lane.b32.xlu0 %v1756_v16, %s1809_s21  ;;  %1752 = vrot.lane.b32.xlu2 %v1751_v7, %s1809_s21 }
 0x10d   : > { %1777 = vrot.lane.b32.xlu1 %v1776_v49, %s1809_s21 }
 0x110   : > { %1772 = vrot.lane.b32.xlu0 %v2354_v13, %s1809_s21  ;;  %1767 = vrot.lane.b32.xlu2 %v1736_v51, %s1808_s20  ;;  %v1451_v13 = vld [vmem:[%s2805_s1 + $0x10] sm:$0xff] }
 0x111   : > { %1460 = vmatpush.bf16.msra.mxu2 %v1451_v13  ;;  %1461 = vmatpush.bf16.msra.mxu3 %v1451_v13 }
 0x112   : > { %1232 = vmatpush.bf16.msra.mxu0 %v1451_v13  ;;  %1459 = vmatpush.bf16.msra.mxu1 %v1451_v13 }
 0x115   : > { %1792 = vrot.lane.b32.xlu1 %v1791_v44, %s1809_s21  ;;  %1463 = vmatpush.bf16.msra.mxu2 %v1450_v47 }
 0x116   : > { %1464 = vmatpush.bf16.msra.mxu3 %v1450_v47  ;;  %1233 = vmatpush.bf16.msra.mxu0 %v1450_v47 }
 0x117   : > { %1462 = vmatpush.bf16.msra.mxu1 %v1450_v47 }
 0x118   : > { %1787 = vrot.lane.b32.xlu0 %v1756_v16, %s1808_s20  ;;  %1782 = vrot.lane.b32.xlu2 %v1751_v7, %s1808_s20 }
 0x119   : > { %1466 = vmatpush.bf16.msra.mxu2 %v1449_v39 }
 0x11a   : > { %1467 = vmatpush.bf16.msra.mxu3 %v1449_v39  ;;  %1234 = vmatpush.bf16.msra.mxu0 %v1449_v39 }
 0x11b   : > { %1465 = vmatpush.bf16.msra.mxu1 %v1449_v39 }
 0x120   : > { %989 = vrot.lane.b32.xlu2 %v2836_v3, %s1809_s21 }
 0x12a   : > { %v1648_v2 = vpop.permute.xlu2 %1647 }
 0x12b   : > { %v1650_v8 = vunpack.i.h.bf16 %v1648_v2  ;;  %v1649_v38 = vunpack.i.l.bf16 %v1648_v2 }
 0x12d   : > { %v1077_v57 = vsel %vm1052_vm6, %v2517_v32, %v1649_v38  ;;  %v1078_v52 = vsel %vm1052_vm6, %v2510_v1, %v1650_v8 }
 0x132   : > { %v1663_v37 = vpop.permute.xlu2 %1662 }
 0x133   : > { %v1665_v10 = vunpack.i.h.bf16 %v1663_v37  ;;  %v1664_v11 = vunpack.i.l.bf16 %v1663_v37 }
 0x135   : > { %v1053_v44 = vsel %vm1052_vm6, %v2286_v26, %v1664_v11 }
 0x137   : > { %v1643_v46 = vpop.permute.xlu1 %1642 }
 0x138   : > { %v1645_v4 = vunpack.i.h.bf16 %v1643_v46  ;;  %v1644_v50 = vunpack.i.l.bf16 %v1643_v46 }
 0x13a   : > { %v1678_v16 = vpop.permute.xlu2 %1677  ;;  %v1070_v22 = vsel %vm1052_vm6, %v2493_v27, %v1645_v4  ;;  %v1069_v32 = vsel %vm1052_vm6, %v2499_v35, %v1644_v50  ;;  %v1054_v27 = vsel %vm1052_vm6, %v2286_v26, %v1665_v10 }
 0x13b   : > { %v1680_v39 = vunpack.i.h.bf16 %v1678_v16  ;;  %v1679_v2 = vunpack.i.l.bf16 %v1678_v16 }
 0x13f   : > { %v1658_v43 = vpop.permute.xlu1 %1657 }
 0x140   : > { %v1660_v21 = vunpack.i.h.bf16 %v1658_v43  ;;  %v1659_v18 = vunpack.i.l.bf16 %v1658_v43 }
 0x142   : > { %v1110_v25 = vsel %vm1085_vm7, %v1077_v57, %v1659_v18  ;;  %v1111_v55 = vsel %vm1085_vm7, %v1078_v52, %v1660_v21  ;;  %v1653_v12 = vpop.permute.xlu0 %1652  ;;  %v1693_v1 = vpop.permute.xlu2 %1692 }
 0x143   : > { %v1130_v54 = vpack.c.bf16 %v1111_v55, %v1110_v25  ;;  %v1655_v28 = vunpack.i.h.bf16 %v1653_v12  ;;  %v1654_v51 = vunpack.i.l.bf16 %v1653_v12  ;;  %v1695_v52 = vunpack.i.h.bf16 %v1693_v1 }
 0x144   : > { %v1694_v4 = vunpack.i.l.bf16 %v1693_v1 }
 0x145   : > { %1441 = vmatmul.msk.bf16.vlgmr.msra.gmra.mxu3 %vm1174_vm8, %v1130_v54  ;;  %v1102_v41 = vsel %vm1085_vm7, %v1069_v32, %v1654_v51  ;;  %v1103_v53 = vsel %vm1085_vm7, %v1070_v22, %v1655_v28 }
 0x146   : > { %v1126_v7 = vpack.c.bf16 %v1103_v53, %v1102_v41 }
 0x147   : > { %v1673_v49 = vpop.permute.xlu1 %1672 }
 0x148   : > { %v1675_v14 = vunpack.i.h.bf16 %v1673_v49  ;;  %v1674_v62 = vunpack.i.l.bf16 %v1673_v49  ;;  %1437 = vmatmul.msk.bf16.vlgmr.msra.gmra.mxu2 %vm1174_vm8, %v1126_v7 }
 0x14a   : > { %v1086_v35 = vsel %vm1085_vm7, %v1053_v44, %v1674_v62  ;;  %v1087_v0 = vsel %vm1085_vm7, %v1054_v27, %v1675_v14  ;;  %v1668_v23 = vpop.permute.xlu0 %1667  ;;  %v1708_v43 = vpop.permute.xlu2 %1707 }
 0x14b   : > { %v1118_v6 = vpack.c.bf16 %v1087_v0, %v1086_v35  ;;  %v1670_v13 = vunpack.i.h.bf16 %v1668_v23  ;;  %v1669_v47 = vunpack.i.l.bf16 %v1668_v23  ;;  %v1710_v32 = vunpack.i.h.bf16 %v1708_v43 }
 0x14c   : > { %v1709_v1 = vunpack.i.l.bf16 %v1708_v43 }
 0x14d   : > { %1429 = vmatmul.msk.bf16.vlgmr.msra.gmra.mxu0 %vm1174_vm8, %v1118_v6  ;;  %v1062_v37 = vsel %vm1052_vm6, %v2547_v61, %v1670_v13  ;;  %v1061_v26 = vsel %vm1052_vm6, %v2541_v17, %v1669_v47  ;;  %v1064_v44 = vsel %vm1052_vm6, %v2394_v42, %v1710_v32 }
 0x14e   : > { %v1094_v46 = vsel %vm1085_vm7, %v1061_v26, %v1679_v2  ;;  %v1095_v8 = vsel %vm1085_vm7, %v1062_v37, %v1680_v39  ;;  %v1063_v27 = vsel %vm1052_vm6, %v2391_v24, %v1709_v1 }
 0x14f   : > { %v1688_v38 = vpop.permute.xlu1 %1687  ;;  %v1122_v21 = vpack.c.bf16 %v1095_v8, %v1094_v46 }
 0x150   : > { %v1690_v54 = vunpack.i.h.bf16 %v1688_v38  ;;  %v1689_v28 = vunpack.i.l.bf16 %v1688_v38 }
 0x151   : > { %1433 = vmatmul.msk.bf16.vlgmr.msra.gmra.mxu1 %vm1174_vm8, %v1122_v21 }
 0x152   : > { %v1683_v18 = vpop.permute.xlu0 %1682  ;;  %v1723_v51 = vpop.permute.xlu2 %1722 }
 0x153   : > { %v1685_v57 = vunpack.i.h.bf16 %v1683_v18  ;;  %v1684_v16 = vunpack.i.l.bf16 %v1683_v18  ;;  %v1725_v2 = vunpack.i.h.bf16 %v1723_v51  ;;  %v1724_v37 = vunpack.i.l.bf16 %v1723_v51 }
 0x155   : > { %v1071_v61 = vsel %vm1052_vm6, %v2835_v56, %v1684_v16  ;;  %v1072_v17 = vsel %vm1052_vm6, %v2836_v3, %v1685_v57  ;;  %v1080_v56 = vsel %vm1052_vm6, %v2344_v5, %v1690_v54  ;;  %v1079_v3 = vsel %vm1052_vm6, %v2341_v59, %v1689_v28 }
 0x156   : > { %v1104_v50 = vsel %vm1085_vm7, %v1071_v61, %v1694_v4  ;;  %v1105_v25 = vsel %vm1085_vm7, %v1072_v17, %v1695_v52  ;;  %v1074_v18 = vsel %vm1052_vm6, %v2331_v33, %v1725_v2  ;;  %v1073_v57 = vsel %vm1052_vm6, %v2347_v60, %v1724_v37 }
 0x157   : > { %v1703_v55 = vpop.permute.xlu1 %1702  ;;  %v1127_v12 = vpack.c.bf16 %v1105_v25, %v1104_v50 }
 0x158   : > { %v1705_v35 = vunpack.i.h.bf16 %v1703_v55  ;;  %v1704_v0 = vunpack.i.l.bf16 %v1703_v55  ;;  %v2837_v55 = vld [vmem:[#allocation8_spill] sm:$0xff] }
 0x159   : > { %1438 = vmatmul.msk.bf16.gmra.mxu2 %vm1174_vm8, %v1127_v12 }
 0x15a   : > { %v1698_v10 = vpop.permute.xlu0 %1697  ;;  %v1738_v13 = vpop.permute.xlu2 %1737  ;;  %v1055_v42 = vsel %vm1052_vm6, %v2381_v40, %v1704_v0  ;;  %v1056_v24 = vsel %vm1052_vm6, %v2397_v63, %v1705_v35 }
 0x15b   : > { %v1700_v11 = vunpack.i.h.bf16 %v1698_v10  ;;  %v1699_v22 = vunpack.i.l.bf16 %v1698_v10  ;;  %v1740_v17 = vunpack.i.h.bf16 %v1738_v13  ;;  %v1739_v50 = vunpack.i.l.bf16 %v1738_v13 }
 0x15d   : > { %v1112_v41 = vsel %vm1085_vm7, %v1079_v3, %v1699_v22  ;;  %v1113_v53 = vsel %vm1085_vm7, %v1080_v56, %v1700_v11 }
 0x15e   : > { %v1131_v7 = vpack.c.bf16 %v1113_v53, %v1112_v41 }
 0x15f   : > { %v1718_v49 = vpop.permute.xlu1 %1717 }
 0x160   : > { %v1720_v14 = vunpack.i.h.bf16 %v1718_v49  ;;  %v1719_v62 = vunpack.i.l.bf16 %v1718_v49  ;;  %1442 = vmatmul.msk.bf16.gmra.mxu3 %vm1174_vm8, %v1131_v7 }
 0x162   : > { %v1096_v59 = vsel %vm1085_vm7, %v1063_v27, %v1719_v62  ;;  %v1097_v5 = vsel %vm1085_vm7, %v1064_v44, %v1720_v14  ;;  %v1713_v23 = vpop.permute.xlu0 %1712  ;;  %v1753_v25 = vpop.permute.xlu2 %1752 }
 0x163   : > { %v1123_v6 = vpack.c.bf16 %v1097_v5, %v1096_v59  ;;  %v1715_v47 = vunpack.i.h.bf16 %v1713_v23  ;;  %v1714_v39 = vunpack.i.l.bf16 %v1713_v23  ;;  %v1755_v32 = vunpack.i.h.bf16 %v1753_v25 }
 0x164   : > { %v1754_v1 = vunpack.i.l.bf16 %v1753_v25 }
 0x165   : > { %1434 = vmatmul.msk.bf16.gmra.mxu1 %vm1174_vm8, %v1123_v6  ;;  %v1088_v26 = vsel %vm1085_vm7, %v1055_v42, %v1714_v39  ;;  %v1089_v46 = vsel %vm1085_vm7, %v1056_v24, %v1715_v47 }
 0x166   : > { %v1119_v8 = vpack.c.bf16 %v1089_v46, %v1088_v26 }
 0x167   : > { %v1733_v38 = vpop.permute.xlu1 %1732 }
 0x168   : > { %v1735_v43 = vunpack.i.h.bf16 %v1733_v38  ;;  %v1734_v21 = vunpack.i.l.bf16 %v1733_v38  ;;  %1430 = vmatmul.msk.bf16.gmra.mxu0 %vm1174_vm8, %v1119_v8 }
 0x16a   : > { %v1106_v40 = vsel %vm1085_vm7, %v1073_v57, %v1734_v21  ;;  %v1107_v63 = vsel %vm1085_vm7, %v1074_v18, %v1735_v43  ;;  %v1728_v16 = vpop.permute.xlu0 %1727  ;;  %v1768_v7 = vpop.permute.xlu2 %1767 }
 0x16b   : > { %v1128_v52 = vpack.c.bf16 %v1107_v63, %v1106_v40  ;;  %v1730_v4 = vunpack.i.h.bf16 %v1728_v16  ;;  %v1729_v61 = vunpack.i.l.bf16 %v1728_v16  ;;  %v1770_v0 = vunpack.i.h.bf16 %v1768_v7 }
 0x16c   : > { %v1769_v59 = vunpack.i.l.bf16 %v1768_v7 }
 0x16d   : > { %1439 = vmatmul.msk.bf16.gmra.mxu2 %vm1174_vm8, %v1128_v52  ;;  %v1082_v33 = vsel %vm1052_vm6, %v2320_v29, %v1730_v4  ;;  %v1081_v60 = vsel %vm1052_vm6, %v2837_v55, %v1729_v61  ;;  %v1084_v2 = vsel %vm1052_vm6, %v2438_v9, %v1770_v0 }
 0x16e   : > { %v1114_v12 = vsel %vm1085_vm7, %v1081_v60, %v1739_v50  ;;  %v1115_v54 = vsel %vm1085_vm7, %v1082_v33, %v1740_v17  ;;  %v1083_v37 = vsel %vm1052_vm6, %v2456_v45, %v1769_v59 }
 0x16f   : > { %v1748_v28 = vpop.permute.xlu1 %1747  ;;  %v1132_v51 = vpack.c.bf16 %v1115_v54, %v1114_v12 }
 0x170   : > { %v1750_v14 = vunpack.i.h.bf16 %v1748_v28  ;;  %v1749_v62 = vunpack.i.l.bf16 %v1748_v28 }
 0x171   : > { %1443 = vmatmul.msk.bf16.gmra.mxu3 %vm1174_vm8, %v1132_v51 }
 0x172   : > { %v1743_v10 = vpop.permute.xlu0 %1742 }
 0x173   : > { %v1745_v11 = vunpack.i.h.bf16 %v1743_v10  ;;  %v1744_v22 = vunpack.i.l.bf16 %v1743_v10 }
 0x175   : > { %v1058_v56 = vsel %vm1052_vm6, %v2360_v58, %v1745_v11  ;;  %v1057_v29 = vsel %vm1052_vm6, %v2374_v36, %v1744_v22  ;;  %v1066_v58 = vsel %vm1052_vm6, %v2417_v20, %v1750_v14  ;;  %v2838_v36 = vld [vmem:[#allocation2_spill] sm:$0xff]  ;;  %v1783_v20 = vpop.permute.xlu2 %1782 }
 0x176   : > { %v1090_v3 = vsel %vm1085_vm7, %v1057_v29, %v1754_v1  ;;  %v1091_v41 = vsel %vm1085_vm7, %v1058_v56, %v1755_v32  ;;  %v1065_v5 = vsel %vm1052_vm6, %v2838_v36, %v1749_v62  ;;  %v1785_v18 = vunpack.i.h.bf16 %v1783_v20  ;;  %v2696_v11 = vld [vmem:[%s2806_s2] ss:$0 sm:$0xff] }
 0x177   : > { %v1763_v53 = vpop.permute.xlu1 %1762  ;;  %v1120_v49 = vpack.c.bf16 %v1091_v41, %v1090_v3  ;;  %v1784_v57 = vunpack.i.l.bf16 %v1783_v20 }
 0x178   : > { %v1765_v42 = vunpack.i.h.bf16 %v1763_v53  ;;  %v1764_v24 = vunpack.i.l.bf16 %v1763_v53  ;;  %v1060_v17 = vsel %vm1052_vm6, %v2488_v31, %v1785_v18 }
 0x179   : > { %1431 = vmatmul.msk.bf16.gmra.mxu0 %vm1174_vm8, %v1120_v49  ;;  %v1059_v50 = vsel %vm1052_vm6, %v2496_v34, %v1784_v57 }
 0x17a   : > { %v1758_v44 = vpop.permute.xlu0 %1757  ;;  %v1076_v9 = vsel %vm1052_vm6, %v2459_v19, %v1765_v42  ;;  %v1075_v45 = vsel %vm1052_vm6, %v2441_v48, %v1764_v24 }
 0x17b   : > { %v1760_v27 = vunpack.i.h.bf16 %v1758_v44  ;;  %v1759_v35 = vunpack.i.l.bf16 %v1758_v44 }
 0x17d   : > { %v1098_v23 = vsel %vm1085_vm7, %v1065_v5, %v1759_v35  ;;  %v1099_v6 = vsel %vm1085_vm7, %v1066_v58, %v1760_v27  ;;  %v990_v54 = vpop.permute.xlu2 %989 }
 0x17e   : > { %v1124_v13 = vpack.c.bf16 %v1099_v6, %v1098_v23 }
 0x17f   : > { %v1778_v47 = vpop.permute.xlu1 %1777 }
 0x180   : > { %v1779_v39 = vunpack.i.l.bf16 %v1778_v47  ;;  %1435 = vmatmul.msk.bf16.gmra.mxu1 %vm1174_vm8, %v1124_v13  ;;  %v1780_v40 = vunpack.i.h.bf16 %v1778_v47 }
 0x182   : > { %v1116_v26 = vsel %vm1085_vm7, %v1083_v37, %v1779_v39  ;;  %v1117_v46 = vsel %vm1085_vm7, %v1084_v2, %v1779_v39  ;;  %v1773_v8 = vpop.permute.xlu0 %1772  ;;  %v1092_v48 = vsel %vm1085_vm7, %v1059_v50, %v1780_v40 }
 0x183   : > { %v1133_v38 = vpack.c.bf16 %v1117_v46, %v1116_v26  ;;  %v1775_v43 = vunpack.i.h.bf16 %v1773_v8  ;;  %v1774_v21 = vunpack.i.l.bf16 %v1773_v8 }
 0x185   : > { %1444 = vmatmul.msk.bf16.gmra.mxu3 %vm1174_vm8, %v1133_v38  ;;  %v1108_v63 = vsel %vm1085_vm7, %v1075_v45, %v1774_v21  ;;  %v1109_v16 = vsel %vm1085_vm7, %v1076_v9, %v1775_v43 }
 0x186   : > { %v1129_v52 = vpack.c.bf16 %v1109_v16, %v1108_v63 }
 0x187   : > { %v1793_v4 = vpop.permute.xlu1 %1792 }
 0x188   : > { %v1794_v61 = vunpack.i.l.bf16 %v1793_v4  ;;  %1440 = vmatmul.msk.bf16.gmra.mxu2 %vm1174_vm8, %v1129_v52  ;;  %v1795_v33 = vunpack.i.h.bf16 %v1793_v4 }
 0x18a   : > { %v1093_v19 = vsel %vm1085_vm7, %v1060_v17, %v1794_v61  ;;  %v1788_v25 = vpop.permute.xlu0 %1787 }
 0x18b   : > { %v1121_v55 = vpack.c.bf16 %v1093_v19, %v1092_v48  ;;  %v1790_v60 = vunpack.i.h.bf16 %v1788_v25  ;;  %v1789_v12 = vunpack.i.l.bf16 %v1788_v25 }
 0x18d   : > { %1432 = vmatmul.msk.bf16.gmra.mxu0 %vm1174_vm8, %v1121_v55  ;;  %v1068_v31 = vsel %vm1052_vm6, %v2474_v30, %v1790_v60  ;;  %v1067_v34 = vsel %vm1052_vm6, %v2471_v15, %v1789_v12 }
 0x18e   : > { %v1100_v28 = vsel %vm1085_vm7, %v1067_v34, %v1795_v33  ;;  %v1101_v51 = vsel %vm1085_vm7, %v1068_v31, %v990_v54 }
 0x18f   : > { %v1125_v10 = vpack.c.bf16 %v1101_v51, %v1100_v28 }
 0x191   : > { %1436 = vmatmul.msk.bf16.gmra.mxu1 %vm1174_vm8, %v1125_v10 }
 0x1c8   : > { %v1296_v15 = vpop.f32.mrf.mxu3 }
 0x1c9   : > { %v1297_v30 = vadd.f32 %v2696_v11, %v1296_v15 }
 0x1ca   : > { %v1236_v22 = vpop.f32.mrf.mxu0 }
 0x1cb   : > { %1341 = vst.msk [vmem:[%s2703_s9 + $0xc0] sm:$0xff] %vm1316_vm9, %v1297_v30  ;;  %v1237_v32 = vadd.f32 %v2696_v11, %v1236_v22  ;;  %v1276_v1 = vpop.f32.mrf.mxu2 }
 0x1cc   : > { %v1277_v56 = vadd.f32 %v2696_v11, %v1276_v1 }
 0x1cd   : > { %1317 = vst.msk [vmem:[%s2703_s9] sm:$0xff] %vm1316_vm9, %v1237_v32 }
 0x1ce   : > { %1333 = vst.msk [vmem:[%s2703_s9 + $0x80] sm:$0xff] %vm1316_vm9, %v1277_v56  ;;  %v1256_v29 = vpop.f32.mrf.mxu1 }
 0x1cf   : > { %v1257_v3 = vadd.f32 %v2696_v11, %v1256_v29 }
 0x1d0   : > { %v1298_v41 = vpop.f32.mrf.mxu3 }
 0x1d1   : > { %v1299_v53 = vadd.f32 %v2696_v11, %v1298_v41  ;;  %1325 = vst.msk [vmem:[%s2703_s9 + $0x40] sm:$0xff] %vm1316_vm9, %v1257_v3 }
 0x1d2   : > { %v1238_v7 = vpop.f32.mrf.mxu0 }
 0x1d3   : > { %1342 = vst.msk [vmem:[%s2703_s9 + $0xc8] sm:$0xff] %vm1316_vm9, %v1299_v53  ;;  %v1239_v49 = vadd.f32 %v2696_v11, %v1238_v7  ;;  %v1278_v14 = vpop.f32.mrf.mxu2 }
 0x1d4   : > { %v1279_v62 = vadd.f32 %v2696_v11, %v1278_v14 }
 0x1d5   : > { %1318 = vst.msk [vmem:[%s2703_s9 + $0x8] sm:$0xff] %vm1316_vm9, %v1239_v49 }
 0x1d6   : > { %1334 = vst.msk [vmem:[%s2703_s9 + $0x88] sm:$0xff] %vm1316_vm9, %v1279_v62  ;;  %v1258_v44 = vpop.f32.mrf.mxu1 }
 0x1d7   : > { %v1259_v27 = vadd.f32 %v2696_v11, %v1258_v44 }
 0x1d9   : > { %1326 = vst.msk [vmem:[%s2703_s9 + $0x48] sm:$0xff] %vm1316_vm9, %v1259_v27 }
 0x1dc   : > { %v1281_v35 = vpop.f32.mrf.mxu2 }
 0x1dd   : > { %v1282_v0 = vadd.f32 %v2696_v11, %v1281_v35 }
 0x1df   : > { %1335 = vst.msk [vmem:[%s2703_s9 + $0x90] sm:$0xff] %vm1316_vm9, %v1282_v0 }
 0x1e2   : > { %v1261_v59 = vpop.f32.mrf.mxu1 }
 0x1e3   : > { %v1262_v58 = vadd.f32 %v2696_v11, %v1261_v59  ;;  %v1301_v36 = vpop.f32.mrf.mxu3 }
 0x1e4   : > { %v1302_v5 = vadd.f32 %v2696_v11, %v1301_v36  ;;  %v1283_v23 = vpop.f32.mrf.mxu2 }
 0x1e5   : > { %1327 = vst.msk [vmem:[%s2703_s9 + $0x50] sm:$0xff] %vm1316_vm9, %v1262_v58  ;;  %v1284_v6 = vadd.f32 %v2696_v11, %v1283_v23  ;;  %v1241_v13 = vpop.f32.mrf.mxu0 }
 0x1e6   : > { %1343 = vst.msk [vmem:[%s2703_s9 + $0xd0] sm:$0xff] %vm1316_vm9, %v1302_v5  ;;  %v1242_v47 = vadd.f32 %v2696_v11, %v1241_v13 }
 0x1e7   : > { %1336 = vst.msk [vmem:[%s2703_s9 + $0x98] sm:$0xff] %vm1316_vm9, %v1284_v6 }
 0x1e8   : > { %1319 = vst.msk [vmem:[%s2703_s9 + $0x10] sm:$0xff] %vm1316_vm9, %v1242_v47 }
 0x1ea   : > { %v1263_v39 = vpop.f32.mrf.mxu1 }
 0x1eb   : > { %v1264_v2 = vadd.f32 %v2696_v11, %v1263_v39  ;;  %v1303_v37 = vpop.f32.mrf.mxu3 }
 0x1ec   : > { %v1304_v42 = vadd.f32 %v2696_v11, %v1303_v37 }
 0x1ed   : > { %1328 = vst.msk [vmem:[%s2703_s9 + $0x58] sm:$0xff] %vm1316_vm9, %v1264_v2  ;;  %v1243_v24 = vpop.f32.mrf.mxu0 }
 0x1ee   : > { %1344 = vst.msk [vmem:[%s2703_s9 + $0xd8] sm:$0xff] %vm1316_vm9, %v1304_v42  ;;  %v1244_v20 = vadd.f32 %v2696_v11, %v1243_v24 }
 0x1f0   : > { %v1286_v26 = vpop.f32.mrf.mxu2  ;;  %1320 = vst.msk [vmem:[%s2703_s9 + $0x18] sm:$0xff] %vm1316_vm9, %v1244_v20 }
 0x1f1   : > { %v1287_v46 = vadd.f32 %v2696_v11, %v1286_v26 }
 0x1f3   : > { %1337 = vst.msk [vmem:[%s2703_s9 + $0xa0] sm:$0xff] %vm1316_vm9, %v1287_v46 }
 0x1f4   : > { %v1306_v8 = vpop.f32.mrf.mxu3 }
 0x1f5   : > { %v1307_v38 = vadd.f32 %v2696_v11, %v1306_v8 }
 0x1f6   : > { %v1246_v43 = vpop.f32.mrf.mxu0 }
 0x1f7   : > { %1345 = vst.msk [vmem:[%s2703_s9 + $0xe0] sm:$0xff] %vm1316_vm9, %v1307_v38  ;;  %v1247_v21 = vadd.f32 %v2696_v11, %v1246_v43 }
 0x1f8   : > { %v1288_v18 = vpop.f32.mrf.mxu2 }
 0x1f9   : > { %v1289_v57 = vadd.f32 %v2696_v11, %v1288_v18  ;;  %1321 = vst.msk [vmem:[%s2703_s9 + $0x20] sm:$0xff] %vm1316_vm9, %v1247_v21 }
 0x1fb   : > { %1338 = vst.msk [vmem:[%s2703_s9 + $0xa8] sm:$0xff] %vm1316_vm9, %v1289_v57 }
 0x1fc   : > { %v1308_v9 = vpop.f32.mrf.mxu3 }
 0x1fd   : > { %v1309_v45 = vadd.f32 %v2696_v11, %v1308_v9  ;;  %v1266_v40 = vpop.f32.mrf.mxu1 }
 0x1fe   : > { %v1267_v63 = vadd.f32 %v2696_v11, %v1266_v40  ;;  %v1248_v16 = vpop.f32.mrf.mxu0 }
 0x1ff   : > { %1346 = vst.msk [vmem:[%s2703_s9 + $0xe8] sm:$0xff] %vm1316_vm9, %v1309_v45  ;;  %v1249_v52 = vadd.f32 %v2696_v11, %v1248_v16 }
 0x200   : > { %1329 = vst.msk [vmem:[%s2703_s9 + $0x60] sm:$0xff] %vm1316_vm9, %v1267_v63 }
 0x201   : > { %1322 = vst.msk [vmem:[%s2703_s9 + $0x28] sm:$0xff] %vm1316_vm9, %v1249_v52 }
 0x205   : > { %v1268_v4 = vpop.f32.mrf.mxu1 }
 0x206   : > { %v1269_v61 = vadd.f32 %v2696_v11, %v1268_v4 }
 0x208   : > { %v1311_v17 = vpop.f32.mrf.mxu3  ;;  %1330 = vst.msk [vmem:[%s2703_s9 + $0x68] sm:$0xff] %vm1316_vm9, %v1269_v61 }
 0x209   : > { %v1312_v50 = vadd.f32 %v2696_v11, %v1311_v17 }
 0x20a   : > { %v1251_v48 = vpop.f32.mrf.mxu0 }
 0x20b   : > { %1347 = vst.msk [vmem:[%s2703_s9 + $0xf0] sm:$0xff] %vm1316_vm9, %v1312_v50  ;;  %v1252_v19 = vadd.f32 %v2696_v11, %v1251_v48  ;;  %v1291_v25 = vpop.f32.mrf.mxu2 }
 0x20c   : > { %v1292_v33 = vadd.f32 %v2696_v11, %v1291_v25 }
 0x20d   : > { %1323 = vst.msk [vmem:[%s2703_s9 + $0x30] sm:$0xff] %vm1316_vm9, %v1252_v19 }
 0x20e   : > { %1339 = vst.msk [vmem:[%s2703_s9 + $0xb0] sm:$0xff] %vm1316_vm9, %v1292_v33  ;;  %v1271_v55 = vpop.f32.mrf.mxu1 }
 0x20f   : > { %v1272_v60 = vadd.f32 %v2696_v11, %v1271_v55 }
 0x210   : > { %v1313_v12 = vpop.f32.mrf.mxu3 }
 0x211   : > { %v1314_v54 = vadd.f32 %v2696_v11, %v1313_v12  ;;  %1331 = vst.msk [vmem:[%s2703_s9 + $0x70] sm:$0xff] %vm1316_vm9, %v1272_v60 }
 0x212   : > { %v1253_v31 = vpop.f32.mrf.mxu0 }
 0x213   : > { %1348 = vst.msk [vmem:[%s2703_s9 + $0xf8] sm:$0xff] %vm1316_vm9, %v1314_v54  ;;  %v1254_v34 = vadd.f32 %v2696_v11, %v1253_v31  ;;  %v1293_v28 = vpop.f32.mrf.mxu2 }
 0x214   : > { %v1294_v51 = vadd.f32 %v2696_v11, %v1293_v28 }
 0x215   : > { %1324 = vst.msk [vmem:[%s2703_s9 + $0x38] sm:$0xff] %vm1316_vm9, %v1254_v34 }
 0x216   : > { %1340 = vst.msk [vmem:[%s2703_s9 + $0xb8] sm:$0xff] %vm1316_vm9, %v1294_v51  ;;  %v1273_v10 = vpop.f32.mrf.mxu1 }
 0x217   : > { %v1274_v15 = vadd.f32 %v2696_v11, %v1273_v10 }
 0x219   : > { %1332 = vst.msk [vmem:[%s2703_s9 + $0x78] sm:$0xff] %vm1316_vm9, %v1274_v15 }
 0x21a PF: > { %s13_s12 = sadd.s32 1, %s1803_s12  }
 0x21b   : > { %p10_p4 = scmp.ge.s32.totalorder %s13_s12, 4  }
 0x21d   :  { %12 = sbr.rel (!%p10_p4) target bundleno = 1 (0x1), region = 62 }

</bundles_post_ra>
